<compile_context>
chip_gen: v7x
topology: tpu7x:2x2x1
jax: 0.10.0
libtpu: 0.0.40
codegen_flags: <defaults>
</compile_context>

<pallas_src>
import functools

import jax
import jax.numpy as jnp
import numpy as np
from jax import lax
from jax.experimental import pallas as pl
from jax.experimental.pallas import tpu as pltpu


def clim_lstm_kernel(Bp, T, H, x_ref, slab_ref, y_ref, g0_ref, hout_ref):
    G = 4 * H
    Ip = x_ref.shape[1]

    # Static, 8-aligned row offsets into the packed parameter slab.
    r_wih0 = 0
    r_whh0 = r_wih0 + Ip
    r_wih1 = r_whh0 + G
    r_whh1 = r_wih1 + G
    r_wfc = r_whh1 + G
    r_b0 = r_wfc + G
    r_b1 = r_b0 + 8
    r_bfc = r_b1 + 8

    # ---- hoisted, non-recurrent layer-0 input projection: one matmul over all T ----
    g0_ref[...] = (jnp.dot(x_ref[...], slab_ref[r_wih0:r_wih0 + Ip, :],
                           preferred_element_type=jnp.float32)
                   + slab_ref[r_b0:r_b0 + 1, :])

    # Hoisted bias broadcast (JAX does not CSE broadcast_in_dim inside the unroll).
    b1b = jnp.broadcast_to(slab_ref[r_b1:r_b1 + 1, :], (Bp, G))

    # Lane mask for the full-vreg activation: gate order is [i | f | o | g], so the
    # first 3H lanes take sigmoid and the last H lanes take tanh.
    lane = lax.broadcasted_iota(jnp.int32, (Bp, G), 1)
    sig_mask = lane < 3 * H

    def activate(gates, c):
        # Full-width activation + XLU rolls: no sub-128-lane extracts on the serial
        # h/c dependency chain.  h/c are carried full-width; only lanes [0, H) are
        # meaningful — the zero-padded weight rows make the other lanes inert.
        act = jnp.where(sig_mask, jax.nn.sigmoid(gates), jnp.tanh(gates))
        f_al = pltpu.roll(act, 3 * H, axis=1)    # f gate -> lanes [0, H)
        o_al = pltpu.roll(act, 2 * H, axis=1)    # o gate -> lanes [0, H)
        g_al = pltpu.roll(act, 1 * H, axis=1)    # g gate -> lanes [0, H)
        c_new = f_al * c + act * g_al            # i gate is already in lanes [0, H)
        h_new = o_al * jnp.tanh(c_new)
        return h_new, c_new

    def step(t, carry):
        h0, c0, h1, c1 = carry
        rows = pl.ds(pl.multiple_of(t * Bp, Bp), Bp)   # 8-aligned sublane slice
        # Layer 0: only the recurrent matmul remains on the serial path.  The
        # (G, G) weights are re-read from the slab ref (loop-invariant, cheap vld)
        # rather than pinned across the whole unrolled region.
        gates0 = g0_ref[rows, :] + jnp.dot(
            h0, slab_ref[r_whh0:r_whh0 + G, :], preferred_element_type=jnp.float32)
        h0, c0 = activate(gates0, c0)
        # Layer 1.
        gates1 = (jnp.dot(h0, slab_ref[r_wih1:r_wih1 + G, :],
                          preferred_element_type=jnp.float32)
                  + jnp.dot(h1, slab_ref[r_whh1:r_whh1 + G, :],
                            preferred_element_type=jnp.float32)
                  + b1b)
        h1, c1 = activate(gates1, c1)
        hout_ref[rows, :] = h1                          # full-vreg lane-dense store
        return (h0, c0, h1, c1)

    z = jnp.zeros((Bp, G), jnp.float32)
    lax.fori_loop(0, T, step, (z, z, z, z), unroll=True)

    # ---- hoisted FC head over all timesteps at once (lane-dense 128-wide output) ----
    # GELU in the torch forward() is dead code (fc_1 consumes the pre-GELU output).
    y_ref[...] = (jnp.dot(hout_ref[...], slab_ref[r_wfc:r_wfc + G, :],
                          preferred_element_type=jnp.float32)
                  + slab_ref[r_bfc:r_bfc + 1, :])


def prepare_params(params):
    """One-time parameter preparation (NOT on the per-call hot path).

    Reorders PyTorch's [i|f|g|o] gate blocks to [i|f|o|g], transposes to x @ W form,
    folds bih+bhh into one bias per layer, zero-pads every contraction dimension to
    the full 4H lane width (so the kernel never slices below 128 lanes), pads the FC
    head to a lane-dense (4H, 4H) block, and packs everything into ONE (rows, 4H)
    f32 slab (a single input DMA for the kernel).
    """
    H = params["whh0"].shape[1]          # torch layout: w_hh is (4H, H)
    G = 4 * H
    I = params["wih0"].shape[1]
    C = params["wfc"].shape[0]
    Ip = ((I + 7) // 8) * 8
    assert C <= G, "num_classes must fit in the 4H lane width"

    def reorder(w):
        # PyTorch gate order [i|f|g|o] along the leading 4H axis -> [i|f|o|g]
        return jnp.concatenate([w[:2 * H], w[3 * H:4 * H], w[2 * H:3 * H]], axis=0)

    def pad_to(w, rows, cols):
        return jnp.pad(w, ((0, rows - w.shape[0]), (0, cols - w.shape[1])))

    wih0 = pad_to(reorder(params["wih0"]).T, Ip, G)                 # (Ip, G)
    whh0 = pad_to(reorder(params["whh0"]).T, G, G)                  # (G, G), zero rows >= H
    wih1 = pad_to(reorder(params["wih1"]).T, G, G)
    whh1 = pad_to(reorder(params["whh1"]).T, G, G)
    wfc = pad_to(params["wfc"].T, G, G)                             # (G, G), lane-dense out
    b0 = pad_to(reorder(params["bih0"] + params["bhh0"]).reshape(1, G), 8, G)
    b1 = pad_to(reorder(params["bih1"] + params["bhh1"]).reshape(1, G), 8, G)
    bfc = pad_to(params["bfc"].reshape(1, C), 8, G)

    slab = jnp.concatenate([wih0, whh0, wih1, whh1, wfc, b0, b1, bfc],
                           axis=0).astype(jnp.float32)
    return {"slab": slab, "H": H, "C": C, "I": I, "Ip": Ip}


@functools.partial(jax.jit, static_argnums=(2, 3, 4))
def _clim_lstm_forward_impl(x, slab, H, C, Ip):
    B, T, I = x.shape
    G = 4 * H
    Bp = max(8, ((B + 7) // 8) * 8)      # pad batch to sublane width

    # (B,T,I) -> (T,Bp,Ip) -> (T*Bp, Ip): time-major, batch padded to 8, feature dim
    # padded to match the slab's wih0 segment, flattened so the hoisted input
    # projection and FC head are single lane/sublane-friendly matmuls.
    x_t = jnp.transpose(x, (1, 0, 2)).astype(jnp.float32)
    x_flat = jnp.pad(x_t, ((0, 0), (0, Bp - B), (0, Ip - I))).reshape(T * Bp, Ip)

    kernel = functools.partial(clim_lstm_kernel, Bp, T, H)
    y_flat = pl.pallas_call(
        kernel,
        out_shape=jax.ShapeDtypeStruct((T * Bp, G), jnp.float32),
        scratch_shapes=[
            pltpu.VMEM((T * Bp, G), jnp.float32),   # hoisted layer-0 gate pre-acts
            pltpu.VMEM((T * Bp, G), jnp.float32),   # layer-1 hidden states (full-width)
        ],
        # TODO(synk): for much larger H on v7x, set vmem_limit_bytes and tile the
        # hoisted projection / FC matmuls; at H=32 everything fits comfortably.
    )(x_flat, slab)

    y = y_flat.reshape(T, Bp, G)[:, :B, :C]           # drop batch/lane padding
    return jnp.transpose(y, (1, 0, 2))                # (B, T, C)


def clim_lstm_forward(x, prepared):
    """x: (B, T, input_size) float32. Returns (B, T, num_classes)."""
    return _clim_lstm_forward_impl(x, prepared["slab"], prepared["H"],
                                   prepared["C"], prepared["Ip"])


def lstm_ref(x, params):
    """Pure-JAX reference (PyTorch gate order / math) for correctness checking."""
    B, T, I = x.shape
    H = params["whh0"].shape[1]

    def run_layer(xs, wih, whh, b):       # xs: (T, B, in)
        def step(carry, x_t):
            h, c = carry
            gates = x_t @ wih.T + h @ whh.T + b
            i = jax.nn.sigmoid(gates[:, 0:H])
            f = jax.nn.sigmoid(gates[:, H:2 * H])
            g = jnp.tanh(gates[:, 2 * H:3 * H])
            o = jax.nn.sigmoid(gates[:, 3 * H:4 * H])
            c = f * c + i * g
            h = o * jnp.tanh(c)
            return (h, c), h
        h0 = jnp.zeros((B, H), jnp.float32)
        _, hs = lax.scan(step, (h0, h0), xs)
        return hs                          # (T, B, H)

    xs = jnp.transpose(x, (1, 0, 2))
    h_l0 = run_layer(xs, params["wih0"], params["whh0"],
                     params["bih0"] + params["bhh0"])
    h_l1 = run_layer(h_l0, params["wih1"], params["whh1"],
                     params["bih1"] + params["bhh1"])
    y = h_l1 @ params["wfc"].T + params["bfc"]
    return jnp.transpose(y, (1, 0, 2))


def init_params(key, input_size, hidden_size, num_classes):
    """Deterministic PyTorch-style init: U(-1/sqrt(H), 1/sqrt(H))."""
    H = hidden_size
    k = 1.0 / np.sqrt(H)
    names_shapes = [
        ("wih0", (4 * H, input_size)), ("whh0", (4 * H, H)),
        ("bih0", (4 * H,)), ("bhh0", (4 * H,)),
        ("wih1", (4 * H, H)), ("whh1", (4 * H, H)),
        ("bih1", (4 * H,)), ("bhh1", (4 * H,)),
        ("wfc", (num_classes, H)), ("bfc", (num_classes,)),
    ]
    keys = jax.random.split(key, len(names_shapes))
    return {name: jax.random.uniform(kk, shape, jnp.float32, -k, k)
            for kk, (name, shape) in zip(keys, names_shapes)}


if __name__ == "__main__":
    # Small shapes consistent with the module: (batch, seq, features).
    B, T, I, H, C = 2, 8, 4, 32, 4   # num_classes == input_size (predict() feeds output back)
    key = jax.random.PRNGKey(0)
    kx, kp = jax.random.split(key)
    x = jax.random.normal(kx, (B, T, I), jnp.float32)
    params = init_params(kp, I, H, C)

    prepared = prepare_params(params)     # one-time weight prep, off the hot path
    y = jax.block_until_ready(clim_lstm_forward(x, prepared))
    y_ref = jax.block_until_ready(lstm_ref(x, params))

    np.testing.assert_allclose(np.asarray(y), np.asarray(y_ref),
                               rtol=1e-5, atol=1e-5)
    assert y.shape == (B, T, C)
    print("KERNEL_OK")
</pallas_src>

<mosaic_0001>
module attributes {stable_mosaic.version = 11 : i64} {
  func.func @clim_lstm_kernel(%arg0: memref<64x8xf32, #tpu.memory_space<vmem>>, %arg1: memref<544x128xf32, #tpu.memory_space<vmem>>, %arg2: memref<64x128xf32, #tpu.memory_space<vmem>>, %arg3: memref<64x128xf32, #tpu.memory_space<vmem>>, %arg4: memref<64x128xf32, #tpu.memory_space<vmem>>) attributes {dimension_semantics = [], scalar_prefetch = 0 : i64, scratch_operands = 2 : i64, tpu.core_type = #tpu.core_type<tc>} {
    %c0 = arith.constant 0 : index
    %c0_0 = arith.constant 0 : index
    %0 = vector.load %arg0[%c0, %c0_0] : memref<64x8xf32, #tpu.memory_space<vmem>>, vector<64x8xf32>
    %c0_1 = arith.constant 0 : index
    %c0_2 = arith.constant 0 : index
    %1 = vector.load %arg1[%c0_1, %c0_2] : memref<544x128xf32, #tpu.memory_space<vmem>>, vector<8x128xf32>
    %cst = arith.constant dense<0.000000e+00> : vector<64x128xf32>
    %2 = tpu.matmul %0, %1, %cst {dimension_numbers = #tpu.dot_dimension_numbers<[1], [0], [0], [1], [0, 0, 1, 1], [], []>} : vector<64x8xf32>, vector<8x128xf32>, vector<64x128xf32> -> vector<64x128xf32>
    %c520 = arith.constant 520 : index
    %c0_3 = arith.constant 0 : index
    %3 = vector.load %arg1[%c520, %c0_3] : memref<544x128xf32, #tpu.memory_space<vmem>>, vector<1x128xf32>
    %4 = vector.broadcast %3 : vector<1x128xf32> to vector<64x128xf32>
    %5 = arith.addf %2, %4 : vector<64x128xf32>
    %c0_4 = arith.constant 0 : index
    %c0_5 = arith.constant 0 : index
    %6 = vector.load %arg3[%c0_4, %c0_5] : memref<64x128xf32, #tpu.memory_space<vmem>>, vector<64x128xf32>
    tpu.vector_store %arg3[%c0_4, %c0_5], %5 {strides = array<i32>} : memref<64x128xf32, #tpu.memory_space<vmem>>, vector<64x128xf32>,
    %c528 = arith.constant 528 : index
    %c0_6 = arith.constant 0 : index
    %7 = vector.load %arg1[%c528, %c0_6] : memref<544x128xf32, #tpu.memory_space<vmem>>, vector<1x128xf32>
    %8 = vector.shape_cast %7 : vector<1x128xf32> to vector<1x128xf32>
    %9 = vector.broadcast %8 : vector<1x128xf32> to vector<8x128xf32>
    %10 = tpu.iota {dimensions = array<i32: 1>} : vector<8x128xi32>
    %c96_i32 = arith.constant 96 : i32
    %11 = vector.broadcast %c96_i32 : i32 to vector<8x128xi32>
    %12 = arith.cmpi slt, %10, %11 : vector<8x128xi32>
    %cst_7 = arith.constant 0.000000e+00 : f32
    %13 = vector.broadcast %cst_7 : f32 to vector<8x128xf32>
    %c0_i32 = arith.constant 0 : i32
    %c8_i32 = arith.constant 8 : i32
    %14 = arith.muli %c0_i32, %c8_i32 : i32
    %15 = tpu.assume_multiple %14, 8 : i32
    %16 = arith.index_cast %15 : i32 to index
    %c0_8 = arith.constant 0 : index
    %17 = vector.load %arg3[%16, %c0_8] : memref<64x128xf32, #tpu.memory_space<vmem>>, vector<8x128xf32>
    %c8 = arith.constant 8 : index
    %c0_9 = arith.constant 0 : index
    %18 = vector.load %arg1[%c8, %c0_9] : memref<544x128xf32, #tpu.memory_space<vmem>>, vector<128x128xf32>
    %cst_10 = arith.constant dense<0.000000e+00> : vector<8x128xf32>
    %19 = tpu.matmul %13, %18, %cst_10 {dimension_numbers = #tpu.dot_dimension_numbers<[1], [0], [0], [1], [0, 0, 1, 1], [], []>} : vector<8x128xf32>, vector<128x128xf32>, vector<8x128xf32> -> vector<8x128xf32>
    %20 = arith.addf %17, %19 : vector<8x128xf32>
    %21 = arith.negf %20 : vector<8x128xf32>
    %22 = math.exp %21 : vector<8x128xf32>
    %cst_11 = arith.constant 1.000000e+00 : f32
    %23 = vector.broadcast %cst_11 : f32 to vector<8x128xf32>
    %24 = arith.addf %23, %22 : vector<8x128xf32>
    %25 = arith.divf %23, %24 : vector<8x128xf32>
    %26 = math.tanh %20 : vector<8x128xf32>
    %27 = arith.select %12, %25, %26 : vector<8x128xi1>, vector<8x128xf32>
    %c96_i32_12 = arith.constant 96 : i32
    %28 = tpu.dynamic_rotate %27 by %c96_i32_12 dim 1 : vector<8x128xf32>, i32 -> vector<8x128xf32>
    %c64_i32 = arith.constant 64 : i32
    %29 = tpu.dynamic_rotate %27 by %c64_i32 dim 1 : vector<8x128xf32>, i32 -> vector<8x128xf32>
    %c32_i32 = arith.constant 32 : i32
    %30 = tpu.dynamic_rotate %27 by %c32_i32 dim 1 : vector<8x128xf32>, i32 -> vector<8x128xf32>
    %31 = arith.mulf %28, %13 : vector<8x128xf32>
    %32 = arith.mulf %27, %30 : vector<8x128xf32>
    %33 = arith.addf %31, %32 : vector<8x128xf32>
    %34 = math.tanh %33 : vector<8x128xf32>
    %35 = arith.mulf %29, %34 : vector<8x128xf32>
    %c136 = arith.constant 136 : index
    %c0_13 = arith.constant 0 : index
    %36 = vector.load %arg1[%c136, %c0_13] : memref<544x128xf32, #tpu.memory_space<vmem>>, vector<128x128xf32>
    %cst_14 = arith.constant dense<0.000000e+00> : vector<8x128xf32>
    %37 = tpu.matmul %35, %36, %cst_14 {dimension_numbers = #tpu.dot_dimension_numbers<[1], [0], [0], [1], [0, 0, 1, 1], [], []>} : vector<8x128xf32>, vector<128x128xf32>, vector<8x128xf32> -> vector<8x128xf32>
    %c264 = arith.constant 264 : index
    %c0_15 = arith.constant 0 : index
    %38 = vector.load %arg1[%c264, %c0_15] : memref<544x128xf32, #tpu.memory_space<vmem>>, vector<128x128xf32>
    %cst_16 = arith.constant dense<0.000000e+00> : vector<8x128xf32>
    %39 = tpu.matmul %13, %38, %cst_16 {dimension_numbers = #tpu.dot_dimension_numbers<[1], [0], [0], [1], [0, 0, 1, 1], [], []>} : vector<8x128xf32>, vector<128x128xf32>, vector<8x128xf32> -> vector<8x128xf32>
    %40 = arith.addf %37, %39 : vector<8x128xf32>
    %41 = arith.addf %40, %9 : vector<8x128xf32>
    %42 = arith.negf %41 : vector<8x128xf32>
    %43 = math.exp %42 : vector<8x128xf32>
    %cst_17 = arith.constant 1.000000e+00 : f32
    %44 = vector.broadcast %cst_17 : f32 to vector<8x128xf32>
    %45 = arith.addf %44, %43 : vector<8x128xf32>
    %46 = arith.divf %44, %45 : vector<8x128xf32>
    %47 = math.tanh %41 : vector<8x128xf32>
    %48 = arith.select %12, %46, %47 : vector<8x128xi1>, vector<8x128xf32>
    %c96_i32_18 = arith.constant 96 : i32
    %49 = tpu.dynamic_rotate %48 by %c96_i32_18 dim 1 : vector<8x128xf32>, i32 -> vector<8x128xf32>
    %c64_i32_19 = arith.constant 64 : i32
    %50 = tpu.dynamic_rotate %48 by %c64_i32_19 dim 1 : vector<8x128xf32>, i32 -> vector<8x128xf32>
    %c32_i32_20 = arith.constant 32 : i32
    %51 = tpu.dynamic_rotate %48 by %c32_i32_20 dim 1 : vector<8x128xf32>, i32 -> vector<8x128xf32>
    %52 = arith.mulf %49, %13 : vector<8x128xf32>
    %53 = arith.mulf %48, %51 : vector<8x128xf32>
    %54 = arith.addf %52, %53 : vector<8x128xf32>
    %55 = math.tanh %54 : vector<8x128xf32>
    %56 = arith.mulf %50, %55 : vector<8x128xf32>
    %57 = arith.index_cast %15 : i32 to index
    %c0_21 = arith.constant 0 : index
    %58 = vector.load %arg4[%57, %c0_21] : memref<64x128xf32, #tpu.memory_space<vmem>>, vector<8x128xf32>
    tpu.vector_store %arg4[%57, %c0_21], %56 {strides = array<i32>} : memref<64x128xf32, #tpu.memory_space<vmem>>, vector<8x128xf32>,
    %c1_i32 = arith.constant 1 : i32
    %c8_i32_22 = arith.constant 8 : i32
    %59 = arith.muli %c1_i32, %c8_i32_22 : i32
    %60 = tpu.assume_multiple %59, 8 : i32
    %61 = arith.index_cast %60 : i32 to index
    %c0_23 = arith.constant 0 : index
    %62 = vector.load %arg3[%61, %c0_23] : memref<64x128xf32, #tpu.memory_space<vmem>>, vector<8x128xf32>
    %c8_24 = arith.constant 8 : index
    %c0_25 = arith.constant 0 : index
    %63 = vector.load %arg1[%c8_24, %c0_25] : memref<544x128xf32, #tpu.memory_space<vmem>>, vector<128x128xf32>
    %cst_26 = arith.constant dense<0.000000e+00> : vector<8x128xf32>
    %64 = tpu.matmul %35, %63, %cst_26 {dimension_numbers = #tpu.dot_dimension_numbers<[1], [0], [0], [1], [0, 0, 1, 1], [], []>} : vector<8x128xf32>, vector<128x128xf32>, vector<8x128xf32> -> vector<8x128xf32>
    %65 = arith.addf %62, %64 : vector<8x128xf32>
    %66 = arith.negf %65 : vector<8x128xf32>
    %67 = math.exp %66 : vector<8x128xf32>
    %cst_27 = arith.constant 1.000000e+00 : f32
    %68 = vector.broadcast %cst_27 : f32 to vector<8x128xf32>
    %69 = arith.addf %68, %67 : vector<8x128xf32>
    %70 = arith.divf %68, %69 : vector<8x128xf32>
    %71 = math.tanh %65 : vector<8x128xf32>
    %72 = arith.select %12, %70, %71 : vector<8x128xi1>, vector<8x128xf32>
    %c96_i32_28 = arith.constant 96 : i32
    %73 = tpu.dynamic_rotate %72 by %c96_i32_28 dim 1 : vector<8x128xf32>, i32 -> vector<8x128xf32>
    %c64_i32_29 = arith.constant 64 : i32
    %74 = tpu.dynamic_rotate %72 by %c64_i32_29 dim 1 : vector<8x128xf32>, i32 -> vector<8x128xf32>
    %c32_i32_30 = arith.constant 32 : i32
    %75 = tpu.dynamic_rotate %72 by %c32_i32_30 dim 1 : vector<8x128xf32>, i32 -> vector<8x128xf32>
    %76 = arith.mulf %73, %33 : vector<8x128xf32>
    %77 = arith.mulf %72, %75 : vector<8x128xf32>
    %78 = arith.addf %76, %77 : vector<8x128xf32>
    %79 = math.tanh %78 : vector<8x128xf32>
    %80 = arith.mulf %74, %79 : vector<8x128xf32>
    %c136_31 = arith.constant 136 : index
    %c0_32 = arith.constant 0 : index
    %81 = vector.load %arg1[%c136_31, %c0_32] : memref<544x128xf32, #tpu.memory_space<vmem>>, vector<128x128xf32>
    %cst_33 = arith.constant dense<0.000000e+00> : vector<8x128xf32>
    %82 = tpu.matmul %80, %81, %cst_33 {dimension_numbers = #tpu.dot_dimension_numbers<[1], [0], [0], [1], [0, 0, 1, 1], [], []>} : vector<8x128xf32>, vector<128x128xf32>, vector<8x128xf32> -> vector<8x128xf32>
    %c264_34 = arith.constant 264 : index
    %c0_35 = arith.constant 0 : index
    %83 = vector.load %arg1[%c264_34, %c0_35] : memref<544x128xf32, #tpu.memory_space<vmem>>, vector<128x128xf32>
    %cst_36 = arith.constant dense<0.000000e+00> : vector<8x128xf32>
    %84 = tpu.matmul %56, %83, %cst_36 {dimension_numbers = #tpu.dot_dimension_numbers<[1], [0], [0], [1], [0, 0, 1, 1], [], []>} : vector<8x128xf32>, vector<128x128xf32>, vector<8x128xf32> -> vector<8x128xf32>
    %85 = arith.addf %82, %84 : vector<8x128xf32>
    %86 = arith.addf %85, %9 : vector<8x128xf32>
    %87 = arith.negf %86 : vector<8x128xf32>
    %88 = math.exp %87 : vector<8x128xf32>
    %cst_37 = arith.constant 1.000000e+00 : f32
    %89 = vector.broadcast %cst_37 : f32 to vector<8x128xf32>
    %90 = arith.addf %89, %88 : vector<8x128xf32>
    %91 = arith.divf %89, %90 : vector<8x128xf32>
    %92 = math.tanh %86 : vector<8x128xf32>
    %93 = arith.select %12, %91, %92 : vector<8x128xi1>, vector<8x128xf32>
    %c96_i32_38 = arith.constant 96 : i32
    %94 = tpu.dynamic_rotate %93 by %c96_i32_38 dim 1 : vector<8x128xf32>, i32 -> vector<8x128xf32>
    %c64_i32_39 = arith.constant 64 : i32
    %95 = tpu.dynamic_rotate %93 by %c64_i32_39 dim 1 : vector<8x128xf32>, i32 -> vector<8x128xf32>
    %c32_i32_40 = arith.constant 32 : i32
    %96 = tpu.dynamic_rotate %93 by %c32_i32_40 dim 1 : vector<8x128xf32>, i32 -> vector<8x128xf32>
    %97 = arith.mulf %94, %54 : vector<8x128xf32>
    %98 = arith.mulf %93, %96 : vector<8x128xf32>
    %99 = arith.addf %97, %98 : vector<8x128xf32>
    %100 = math.tanh %99 : vector<8x128xf32>
    %101 = arith.mulf %95, %100 : vector<8x128xf32>
    %102 = arith.index_cast %60 : i32 to index
    %c0_41 = arith.constant 0 : index
    %103 = vector.load %arg4[%102, %c0_41] : memref<64x128xf32, #tpu.memory_space<vmem>>, vector<8x128xf32>
    tpu.vector_store %arg4[%102, %c0_41], %101 {strides = array<i32>} : memref<64x128xf32, #tpu.memory_space<vmem>>, vector<8x128xf32>,
    %c2_i32 = arith.constant 2 : i32
    %c8_i32_42 = arith.constant 8 : i32
    %104 = arith.muli %c2_i32, %c8_i32_42 : i32
    %105 = tpu.assume_multiple %104, 8 : i32
    %106 = arith.index_cast %105 : i32 to index
    %c0_43 = arith.constant 0 : index
    %107 = vector.load %arg3[%106, %c0_43] : memref<64x128xf32, #tpu.memory_space<vmem>>, vector<8x128xf32>
    %c8_44 = arith.constant 8 : index
    %c0_45 = arith.constant 0 : index
    %108 = vector.load %arg1[%c8_44, %c0_45] : memref<544x128xf32, #tpu.memory_space<vmem>>, vector<128x128xf32>
    %cst_46 = arith.constant dense<0.000000e+00> : vector<8x128xf32>
    %109 = tpu.matmul %80, %108, %cst_46 {dimension_numbers = #tpu.dot_dimension_numbers<[1], [0], [0], [1], [0, 0, 1, 1], [], []>} : vector<8x128xf32>, vector<128x128xf32>, vector<8x128xf32> -> vector<8x128xf32>
    %110 = arith.addf %107, %109 : vector<8x128xf32>
    %111 = arith.negf %110 : vector<8x128xf32>
    %112 = math.exp %111 : vector<8x128xf32>
    %cst_47 = arith.constant 1.000000e+00 : f32
    %113 = vector.broadcast %cst_47 : f32 to vector<8x128xf32>
    %114 = arith.addf %113, %112 : vector<8x128xf32>
    %115 = arith.divf %113, %114 : vector<8x128xf32>
    %116 = math.tanh %110 : vector<8x128xf32>
    %117 = arith.select %12, %115, %116 : vector<8x128xi1>, vector<8x128xf32>
    %c96_i32_48 = arith.constant 96 : i32
    %118 = tpu.dynamic_rotate %117 by %c96_i32_48 dim 1 : vector<8x128xf32>, i32 -> vector<8x128xf32>
    %c64_i32_49 = arith.constant 64 : i32
    %119 = tpu.dynamic_rotate %117 by %c64_i32_49 dim 1 : vector<8x128xf32>, i32 -> vector<8x128xf32>
    %c32_i32_50 = arith.constant 32 : i32
    %120 = tpu.dynamic_rotate %117 by %c32_i32_50 dim 1 : vector<8x128xf32>, i32 -> vector<8x128xf32>
    %121 = arith.mulf %118, %78 : vector<8x128xf32>
    %122 = arith.mulf %117, %120 : vector<8x128xf32>
    %123 = arith.addf %121, %122 : vector<8x128xf32>
    %124 = math.tanh %123 : vector<8x128xf32>
    %125 = arith.mulf %119, %124 : vector<8x128xf32>
    %c136_51 = arith.constant 136 : index
    %c0_52 = arith.constant 0 : index
    %126 = vector.load %arg1[%c136_51, %c0_52] : memref<544x128xf32, #tpu.memory_space<vmem>>, vector<128x128xf32>
    %cst_53 = arith.constant dense<0.000000e+00> : vector<8x128xf32>
    %127 = tpu.matmul %125, %126, %cst_53 {dimension_numbers = #tpu.dot_dimension_numbers<[1], [0], [0], [1], [0, 0, 1, 1], [], []>} : vector<8x128xf32>, vector<128x128xf32>, vector<8x128xf32> -> vector<8x128xf32>
    %c264_54 = arith.constant 264 : index
    %c0_55 = arith.constant 0 : index
    %128 = vector.load %arg1[%c264_54, %c0_55] : memref<544x128xf32, #tpu.memory_space<vmem>>, vector<128x128xf32>
    %cst_56 = arith.constant dense<0.000000e+00> : vector<8x128xf32>
    %129 = tpu.matmul %101, %128, %cst_56 {dimension_numbers = #tpu.dot_dimension_numbers<[1], [0], [0], [1], [0, 0, 1, 1], [], []>} : vector<8x128xf32>, vector<128x128xf32>, vector<8x128xf32> -> vector<8x128xf32>
    %130 = arith.addf %127, %129 : vector<8x128xf32>
    %131 = arith.addf %130, %9 : vector<8x128xf32>
    %132 = arith.negf %131 : vector<8x128xf32>
    %133 = math.exp %132 : vector<8x128xf32>
    %cst_57 = arith.constant 1.000000e+00 : f32
    %134 = vector.broadcast %cst_57 : f32 to vector<8x128xf32>
    %135 = arith.addf %134, %133 : vector<8x128xf32>
    %136 = arith.divf %134, %135 : vector<8x128xf32>
    %137 = math.tanh %131 : vector<8x128xf32>
    %138 = arith.select %12, %136, %137 : vector<8x128xi1>, vector<8x128xf32>
    %c96_i32_58 = arith.constant 96 : i32
    %139 = tpu.dynamic_rotate %138 by %c96_i32_58 dim 1 : vector<8x128xf32>, i32 -> vector<8x128xf32>
    %c64_i32_59 = arith.constant 64 : i32
    %140 = tpu.dynamic_rotate %138 by %c64_i32_59 dim 1 : vector<8x128xf32>, i32 -> vector<8x128xf32>
    %c32_i32_60 = arith.constant 32 : i32
    %141 = tpu.dynamic_rotate %138 by %c32_i32_60 dim 1 : vector<8x128xf32>, i32 -> vector<8x128xf32>
    %142 = arith.mulf %139, %99 : vector<8x128xf32>
    %143 = arith.mulf %138, %141 : vector<8x128xf32>
    %144 = arith.addf %142, %143 : vector<8x128xf32>
    %145 = math.tanh %144 : vector<8x128xf32>
    %146 = arith.mulf %140, %145 : vector<8x128xf32>
    %147 = arith.index_cast %105 : i32 to index
    %c0_61 = arith.constant 0 : index
    %148 = vector.load %arg4[%147, %c0_61] : memref<64x128xf32, #tpu.memory_space<vmem>>, vector<8x128xf32>
    tpu.vector_store %arg4[%147, %c0_61], %146 {strides = array<i32>} : memref<64x128xf32, #tpu.memory_space<vmem>>, vector<8x128xf32>,
    %c3_i32 = arith.constant 3 : i32
    %c8_i32_62 = arith.constant 8 : i32
    %149 = arith.muli %c3_i32, %c8_i32_62 : i32
    %150 = tpu.assume_multiple %149, 8 : i32
    %151 = arith.index_cast %150 : i32 to index
    %c0_63 = arith.constant 0 : index
    %152 = vector.load %arg3[%151, %c0_63] : memref<64x128xf32, #tpu.memory_space<vmem>>, vector<8x128xf32>
    %c8_64 = arith.constant 8 : index
    %c0_65 = arith.constant 0 : index
    %153 = vector.load %arg1[%c8_64, %c0_65] : memref<544x128xf32, #tpu.memory_space<vmem>>, vector<128x128xf32>
    %cst_66 = arith.constant dense<0.000000e+00> : vector<8x128xf32>
    %154 = tpu.matmul %125, %153, %cst_66 {dimension_numbers = #tpu.dot_dimension_numbers<[1], [0], [0], [1], [0, 0, 1, 1], [], []>} : vector<8x128xf32>, vector<128x128xf32>, vector<8x128xf32> -> vector<8x128xf32>
    %155 = arith.addf %152, %154 : vector<8x128xf32>
    %156 = arith.negf %155 : vector<8x128xf32>
    %157 = math.exp %156 : vector<8x128xf32>
    %cst_67 = arith.constant 1.000000e+00 : f32
    %158 = vector.broadcast %cst_67 : f32 to vector<8x128xf32>
    %159 = arith.addf %158, %157 : vector<8x128xf32>
    %160 = arith.divf %158, %159 : vector<8x128xf32>
    %161 = math.tanh %155 : vector<8x128xf32>
    %162 = arith.select %12, %160, %161 : vector<8x128xi1>, vector<8x128xf32>
    %c96_i32_68 = arith.constant 96 : i32
    %163 = tpu.dynamic_rotate %162 by %c96_i32_68 dim 1 : vector<8x128xf32>, i32 -> vector<8x128xf32>
    %c64_i32_69 = arith.constant 64 : i32
    %164 = tpu.dynamic_rotate %162 by %c64_i32_69 dim 1 : vector<8x128xf32>, i32 -> vector<8x128xf32>
    %c32_i32_70 = arith.constant 32 : i32
    %165 = tpu.dynamic_rotate %162 by %c32_i32_70 dim 1 : vector<8x128xf32>, i32 -> vector<8x128xf32>
    %166 = arith.mulf %163, %123 : vector<8x128xf32>
    %167 = arith.mulf %162, %165 : vector<8x128xf32>
    %168 = arith.addf %166, %167 : vector<8x128xf32>
    %169 = math.tanh %168 : vector<8x128xf32>
    %170 = arith.mulf %164, %169 : vector<8x128xf32>
    %c136_71 = arith.constant 136 : index
    %c0_72 = arith.constant 0 : index
    %171 = vector.load %arg1[%c136_71, %c0_72] : memref<544x128xf32, #tpu.memory_space<vmem>>, vector<128x128xf32>
    %cst_73 = arith.constant dense<0.000000e+00> : vector<8x128xf32>
    %172 = tpu.matmul %170, %171, %cst_73 {dimension_numbers = #tpu.dot_dimension_numbers<[1], [0], [0], [1], [0, 0, 1, 1], [], []>} : vector<8x128xf32>, vector<128x128xf32>, vector<8x128xf32> -> vector<8x128xf32>
    %c264_74 = arith.constant 264 : index
    %c0_75 = arith.constant 0 : index
    %173 = vector.load %arg1[%c264_74, %c0_75] : memref<544x128xf32, #tpu.memory_space<vmem>>, vector<128x128xf32>
    %cst_76 = arith.constant dense<0.000000e+00> : vector<8x128xf32>
    %174 = tpu.matmul %146, %173, %cst_76 {dimension_numbers = #tpu.dot_dimension_numbers<[1], [0], [0], [1], [0, 0, 1, 1], [], []>} : vector<8x128xf32>, vector<128x128xf32>, vector<8x128xf32> -> vector<8x128xf32>
    %175 = arith.addf %172, %174 : vector<8x128xf32>
    %176 = arith.addf %175, %9 : vector<8x128xf32>
    %177 = arith.negf %176 : vector<8x128xf32>
    %178 = math.exp %177 : vector<8x128xf32>
    %cst_77 = arith.constant 1.000000e+00 : f32
    %179 = vector.broadcast %cst_77 : f32 to vector<8x128xf32>
    %180 = arith.addf %179, %178 : vector<8x128xf32>
    %181 = arith.divf %179, %180 : vector<8x128xf32>
    %182 = math.tanh %176 : vector<8x128xf32>
    %183 = arith.select %12, %181, %182 : vector<8x128xi1>, vector<8x128xf32>
    %c96_i32_78 = arith.constant 96 : i32
    %184 = tpu.dynamic_rotate %183 by %c96_i32_78 dim 1 : vector<8x128xf32>, i32 -> vector<8x128xf32>
    %c64_i32_79 = arith.constant 64 : i32
    %185 = tpu.dynamic_rotate %183 by %c64_i32_79 dim 1 : vector<8x128xf32>, i32 -> vector<8x128xf32>
    %c32_i32_80 = arith.constant 32 : i32
    %186 = tpu.dynamic_rotate %183 by %c32_i32_80 dim 1 : vector<8x128xf32>, i32 -> vector<8x128xf32>
    %187 = arith.mulf %184, %144 : vector<8x128xf32>
    %188 = arith.mulf %183, %186 : vector<8x128xf32>
    %189 = arith.addf %187, %188 : vector<8x128xf32>
    %190 = math.tanh %189 : vector<8x128xf32>
    %191 = arith.mulf %185, %190 : vector<8x128xf32>
    %192 = arith.index_cast %150 : i32 to index
    %c0_81 = arith.constant 0 : index
    %193 = vector.load %arg4[%192, %c0_81] : memref<64x128xf32, #tpu.memory_space<vmem>>, vector<8x128xf32>
    tpu.vector_store %arg4[%192, %c0_81], %191 {strides = array<i32>} : memref<64x128xf32, #tpu.memory_space<vmem>>, vector<8x128xf32>,
    %c4_i32 = arith.constant 4 : i32
    %c8_i32_82 = arith.constant 8 : i32
    %194 = arith.muli %c4_i32, %c8_i32_82 : i32
    %195 = tpu.assume_multiple %194, 8 : i32
    %196 = arith.index_cast %195 : i32 to index
    %c0_83 = arith.constant 0 : index
    %197 = vector.load %arg3[%196, %c0_83] : memref<64x128xf32, #tpu.memory_space<vmem>>, vector<8x128xf32>
    %c8_84 = arith.constant 8 : index
    %c0_85 = arith.constant 0 : index
    %198 = vector.load %arg1[%c8_84, %c0_85] : memref<544x128xf32, #tpu.memory_space<vmem>>, vector<128x128xf32>
    %cst_86 = arith.constant dense<0.000000e+00> : vector<8x128xf32>
    %199 = tpu.matmul %170, %198, %cst_86 {dimension_numbers = #tpu.dot_dimension_numbers<[1], [0], [0], [1], [0, 0, 1, 1], [], []>} : vector<8x128xf32>, vector<128x128xf32>, vector<8x128xf32> -> vector<8x128xf32>
    %200 = arith.addf %197, %199 : vector<8x128xf32>
    %201 = arith.negf %200 : vector<8x128xf32>
    %202 = math.exp %201 : vector<8x128xf32>
    %cst_87 = arith.constant 1.000000e+00 : f32
    %203 = vector.broadcast %cst_87 : f32 to vector<8x128xf32>
    %204 = arith.addf %203, %202 : vector<8x128xf32>
    %205 = arith.divf %203, %204 : vector<8x128xf32>
    %206 = math.tanh %200 : vector<8x128xf32>
    %207 = arith.select %12, %205, %206 : vector<8x128xi1>, vector<8x128xf32>
    %c96_i32_88 = arith.constant 96 : i32
    %208 = tpu.dynamic_rotate %207 by %c96_i32_88 dim 1 : vector<8x128xf32>, i32 -> vector<8x128xf32>
    %c64_i32_89 = arith.constant 64 : i32
    %209 = tpu.dynamic_rotate %207 by %c64_i32_89 dim 1 : vector<8x128xf32>, i32 -> vector<8x128xf32>
    %c32_i32_90 = arith.constant 32 : i32
    %210 = tpu.dynamic_rotate %207 by %c32_i32_90 dim 1 : vector<8x128xf32>, i32 -> vector<8x128xf32>
    %211 = arith.mulf %208, %168 : vector<8x128xf32>
    %212 = arith.mulf %207, %210 : vector<8x128xf32>
    %213 = arith.addf %211, %212 : vector<8x128xf32>
    %214 = math.tanh %213 : vector<8x128xf32>
    %215 = arith.mulf %209, %214 : vector<8x128xf32>
    %c136_91 = arith.constant 136 : index
    %c0_92 = arith.constant 0 : index
    %216 = vector.load %arg1[%c136_91, %c0_92] : memref<544x128xf32, #tpu.memory_space<vmem>>, vector<128x128xf32>
    %cst_93 = arith.constant dense<0.000000e+00> : vector<8x128xf32>
    %217 = tpu.matmul %215, %216, %cst_93 {dimension_numbers = #tpu.dot_dimension_numbers<[1], [0], [0], [1], [0, 0, 1, 1], [], []>} : vector<8x128xf32>, vector<128x128xf32>, vector<8x128xf32> -> vector<8x128xf32>
    %c264_94 = arith.constant 264 : index
    %c0_95 = arith.constant 0 : index
    %218 = vector.load %arg1[%c264_94, %c0_95] : memref<544x128xf32, #tpu.memory_space<vmem>>, vector<128x128xf32>
    %cst_96 = arith.constant dense<0.000000e+00> : vector<8x128xf32>
    %219 = tpu.matmul %191, %218, %cst_96 {dimension_numbers = #tpu.dot_dimension_numbers<[1], [0], [0], [1], [0, 0, 1, 1], [], []>} : vector<8x128xf32>, vector<128x128xf32>, vector<8x128xf32> -> vector<8x128xf32>
    %220 = arith.addf %217, %219 : vector<8x128xf32>
    %221 = arith.addf %220, %9 : vector<8x128xf32>
    %222 = arith.negf %221 : vector<8x128xf32>
    %223 = math.exp %222 : vector<8x128xf32>
    %cst_97 = arith.constant 1.000000e+00 : f32
    %224 = vector.broadcast %cst_97 : f32 to vector<8x128xf32>
    %225 = arith.addf %224, %223 : vector<8x128xf32>
    %226 = arith.divf %224, %225 : vector<8x128xf32>
    %227 = math.tanh %221 : vector<8x128xf32>
    %228 = arith.select %12, %226, %227 : vector<8x128xi1>, vector<8x128xf32>
    %c96_i32_98 = arith.constant 96 : i32
    %229 = tpu.dynamic_rotate %228 by %c96_i32_98 dim 1 : vector<8x128xf32>, i32 -> vector<8x128xf32>
    %c64_i32_99 = arith.constant 64 : i32
    %230 = tpu.dynamic_rotate %228 by %c64_i32_99 dim 1 : vector<8x128xf32>, i32 -> vector<8x128xf32>
    %c32_i32_100 = arith.constant 32 : i32
    %231 = tpu.dynamic_rotate %228 by %c32_i32_100 dim 1 : vector<8x128xf32>, i32 -> vector<8x128xf32>
    %232 = arith.mulf %229, %189 : vector<8x128xf32>
    %233 = arith.mulf %228, %231 : vector<8x128xf32>
    %234 = arith.addf %232, %233 : vector<8x128xf32>
    %235 = math.tanh %234 : vector<8x128xf32>
    %236 = arith.mulf %230, %235 : vector<8x128xf32>
    %237 = arith.index_cast %195 : i32 to index
    %c0_101 = arith.constant 0 : index
    %238 = vector.load %arg4[%237, %c0_101] : memref<64x128xf32, #tpu.memory_space<vmem>>, vector<8x128xf32>
    tpu.vector_store %arg4[%237, %c0_101], %236 {strides = array<i32>} : memref<64x128xf32, #tpu.memory_space<vmem>>, vector<8x128xf32>,
    %c5_i32 = arith.constant 5 : i32
    %c8_i32_102 = arith.constant 8 : i32
    %239 = arith.muli %c5_i32, %c8_i32_102 : i32
    %240 = tpu.assume_multiple %239, 8 : i32
    %241 = arith.index_cast %240 : i32 to index
    %c0_103 = arith.constant 0 : index
    %242 = vector.load %arg3[%241, %c0_103] : memref<64x128xf32, #tpu.memory_space<vmem>>, vector<8x128xf32>
    %c8_104 = arith.constant 8 : index
    %c0_105 = arith.constant 0 : index
    %243 = vector.load %arg1[%c8_104, %c0_105] : memref<544x128xf32, #tpu.memory_space<vmem>>, vector<128x128xf32>
    %cst_106 = arith.constant dense<0.000000e+00> : vector<8x128xf32>
    %244 = tpu.matmul %215, %243, %cst_106 {dimension_numbers = #tpu.dot_dimension_numbers<[1], [0], [0], [1], [0, 0, 1, 1], [], []>} : vector<8x128xf32>, vector<128x128xf32>, vector<8x128xf32> -> vector<8x128xf32>
    %245 = arith.addf %242, %244 : vector<8x128xf32>
    %246 = arith.negf %245 : vector<8x128xf32>
    %247 = math.exp %246 : vector<8x128xf32>
    %cst_107 = arith.constant 1.000000e+00 : f32
    %248 = vector.broadcast %cst_107 : f32 to vector<8x128xf32>
    %249 = arith.addf %248, %247 : vector<8x128xf32>
    %250 = arith.divf %248, %249 : vector<8x128xf32>
    %251 = math.tanh %245 : vector<8x128xf32>
    %252 = arith.select %12, %250, %251 : vector<8x128xi1>, vector<8x128xf32>
    %c96_i32_108 = arith.constant 96 : i32
    %253 = tpu.dynamic_rotate %252 by %c96_i32_108 dim 1 : vector<8x128xf32>, i32 -> vector<8x128xf32>
    %c64_i32_109 = arith.constant 64 : i32
    %254 = tpu.dynamic_rotate %252 by %c64_i32_109 dim 1 : vector<8x128xf32>, i32 -> vector<8x128xf32>
    %c32_i32_110 = arith.constant 32 : i32
    %255 = tpu.dynamic_rotate %252 by %c32_i32_110 dim 1 : vector<8x128xf32>, i32 -> vector<8x128xf32>
    %256 = arith.mulf %253, %213 : vector<8x128xf32>
    %257 = arith.mulf %252, %255 : vector<8x128xf32>
    %258 = arith.addf %256, %257 : vector<8x128xf32>
    %259 = math.tanh %258 : vector<8x128xf32>
    %260 = arith.mulf %254, %259 : vector<8x128xf32>
    %c136_111 = arith.constant 136 : index
    %c0_112 = arith.constant 0 : index
    %261 = vector.load %arg1[%c136_111, %c0_112] : memref<544x128xf32, #tpu.memory_space<vmem>>, vector<128x128xf32>
    %cst_113 = arith.constant dense<0.000000e+00> : vector<8x128xf32>
    %262 = tpu.matmul %260, %261, %cst_113 {dimension_numbers = #tpu.dot_dimension_numbers<[1], [0], [0], [1], [0, 0, 1, 1], [], []>} : vector<8x128xf32>, vector<128x128xf32>, vector<8x128xf32> -> vector<8x128xf32>
    %c264_114 = arith.constant 264 : index
    %c0_115 = arith.constant 0 : index
    %263 = vector.load %arg1[%c264_114, %c0_115] : memref<544x128xf32, #tpu.memory_space<vmem>>, vector<128x128xf32>
    %cst_116 = arith.constant dense<0.000000e+00> : vector<8x128xf32>
    %264 = tpu.matmul %236, %263, %cst_116 {dimension_numbers = #tpu.dot_dimension_numbers<[1], [0], [0], [1], [0, 0, 1, 1], [], []>} : vector<8x128xf32>, vector<128x128xf32>, vector<8x128xf32> -> vector<8x128xf32>
    %265 = arith.addf %262, %264 : vector<8x128xf32>
    %266 = arith.addf %265, %9 : vector<8x128xf32>
    %267 = arith.negf %266 : vector<8x128xf32>
    %268 = math.exp %267 : vector<8x128xf32>
    %cst_117 = arith.constant 1.000000e+00 : f32
    %269 = vector.broadcast %cst_117 : f32 to vector<8x128xf32>
    %270 = arith.addf %269, %268 : vector<8x128xf32>
    %271 = arith.divf %269, %270 : vector<8x128xf32>
    %272 = math.tanh %266 : vector<8x128xf32>
    %273 = arith.select %12, %271, %272 : vector<8x128xi1>, vector<8x128xf32>
    %c96_i32_118 = arith.constant 96 : i32
    %274 = tpu.dynamic_rotate %273 by %c96_i32_118 dim 1 : vector<8x128xf32>, i32 -> vector<8x128xf32>
    %c64_i32_119 = arith.constant 64 : i32
    %275 = tpu.dynamic_rotate %273 by %c64_i32_119 dim 1 : vector<8x128xf32>, i32 -> vector<8x128xf32>
    %c32_i32_120 = arith.constant 32 : i32
    %276 = tpu.dynamic_rotate %273 by %c32_i32_120 dim 1 : vector<8x128xf32>, i32 -> vector<8x128xf32>
    %277 = arith.mulf %274, %234 : vector<8x128xf32>
    %278 = arith.mulf %273, %276 : vector<8x128xf32>
    %279 = arith.addf %277, %278 : vector<8x128xf32>
    %280 = math.tanh %279 : vector<8x128xf32>
    %281 = arith.mulf %275, %280 : vector<8x128xf32>
    %282 = arith.index_cast %240 : i32 to index
    %c0_121 = arith.constant 0 : index
    %283 = vector.load %arg4[%282, %c0_121] : memref<64x128xf32, #tpu.memory_space<vmem>>, vector<8x128xf32>
    tpu.vector_store %arg4[%282, %c0_121], %281 {strides = array<i32>} : memref<64x128xf32, #tpu.memory_space<vmem>>, vector<8x128xf32>,
    %c6_i32 = arith.constant 6 : i32
    %c8_i32_122 = arith.constant 8 : i32
    %284 = arith.muli %c6_i32, %c8_i32_122 : i32
    %285 = tpu.assume_multiple %284, 8 : i32
    %286 = arith.index_cast %285 : i32 to index
    %c0_123 = arith.constant 0 : index
    %287 = vector.load %arg3[%286, %c0_123] : memref<64x128xf32, #tpu.memory_space<vmem>>, vector<8x128xf32>
    %c8_124 = arith.constant 8 : index
    %c0_125 = arith.constant 0 : index
    %288 = vector.load %arg1[%c8_124, %c0_125] : memref<544x128xf32, #tpu.memory_space<vmem>>, vector<128x128xf32>
    %cst_126 = arith.constant dense<0.000000e+00> : vector<8x128xf32>
    %289 = tpu.matmul %260, %288, %cst_126 {dimension_numbers = #tpu.dot_dimension_numbers<[1], [0], [0], [1], [0, 0, 1, 1], [], []>} : vector<8x128xf32>, vector<128x128xf32>, vector<8x128xf32> -> vector<8x128xf32>
    %290 = arith.addf %287, %289 : vector<8x128xf32>
    %291 = arith.negf %290 : vector<8x128xf32>
    %292 = math.exp %291 : vector<8x128xf32>
    %cst_127 = arith.constant 1.000000e+00 : f32
    %293 = vector.broadcast %cst_127 : f32 to vector<8x128xf32>
    %294 = arith.addf %293, %292 : vector<8x128xf32>
    %295 = arith.divf %293, %294 : vector<8x128xf32>
    %296 = math.tanh %290 : vector<8x128xf32>
    %297 = arith.select %12, %295, %296 : vector<8x128xi1>, vector<8x128xf32>
    %c96_i32_128 = arith.constant 96 : i32
    %298 = tpu.dynamic_rotate %297 by %c96_i32_128 dim 1 : vector<8x128xf32>, i32 -> vector<8x128xf32>
    %c64_i32_129 = arith.constant 64 : i32
    %299 = tpu.dynamic_rotate %297 by %c64_i32_129 dim 1 : vector<8x128xf32>, i32 -> vector<8x128xf32>
    %c32_i32_130 = arith.constant 32 : i32
    %300 = tpu.dynamic_rotate %297 by %c32_i32_130 dim 1 : vector<8x128xf32>, i32 -> vector<8x128xf32>
    %301 = arith.mulf %298, %258 : vector<8x128xf32>
    %302 = arith.mulf %297, %300 : vector<8x128xf32>
    %303 = arith.addf %301, %302 : vector<8x128xf32>
    %304 = math.tanh %303 : vector<8x128xf32>
    %305 = arith.mulf %299, %304 : vector<8x128xf32>
    %c136_131 = arith.constant 136 : index
    %c0_132 = arith.constant 0 : index
    %306 = vector.load %arg1[%c136_131, %c0_132] : memref<544x128xf32, #tpu.memory_space<vmem>>, vector<128x128xf32>
    %cst_133 = arith.constant dense<0.000000e+00> : vector<8x128xf32>
    %307 = tpu.matmul %305, %306, %cst_133 {dimension_numbers = #tpu.dot_dimension_numbers<[1], [0], [0], [1], [0, 0, 1, 1], [], []>} : vector<8x128xf32>, vector<128x128xf32>, vector<8x128xf32> -> vector<8x128xf32>
    %c264_134 = arith.constant 264 : index
    %c0_135 = arith.constant 0 : index
    %308 = vector.load %arg1[%c264_134, %c0_135] : memref<544x128xf32, #tpu.memory_space<vmem>>, vector<128x128xf32>
    %cst_136 = arith.constant dense<0.000000e+00> : vector<8x128xf32>
    %309 = tpu.matmul %281, %308, %cst_136 {dimension_numbers = #tpu.dot_dimension_numbers<[1], [0], [0], [1], [0, 0, 1, 1], [], []>} : vector<8x128xf32>, vector<128x128xf32>, vector<8x128xf32> -> vector<8x128xf32>
    %310 = arith.addf %307, %309 : vector<8x128xf32>
    %311 = arith.addf %310, %9 : vector<8x128xf32>
    %312 = arith.negf %311 : vector<8x128xf32>
    %313 = math.exp %312 : vector<8x128xf32>
    %cst_137 = arith.constant 1.000000e+00 : f32
    %314 = vector.broadcast %cst_137 : f32 to vector<8x128xf32>
    %315 = arith.addf %314, %313 : vector<8x128xf32>
    %316 = arith.divf %314, %315 : vector<8x128xf32>
    %317 = math.tanh %311 : vector<8x128xf32>
    %318 = arith.select %12, %316, %317 : vector<8x128xi1>, vector<8x128xf32>
    %c96_i32_138 = arith.constant 96 : i32
    %319 = tpu.dynamic_rotate %318 by %c96_i32_138 dim 1 : vector<8x128xf32>, i32 -> vector<8x128xf32>
    %c64_i32_139 = arith.constant 64 : i32
    %320 = tpu.dynamic_rotate %318 by %c64_i32_139 dim 1 : vector<8x128xf32>, i32 -> vector<8x128xf32>
    %c32_i32_140 = arith.constant 32 : i32
    %321 = tpu.dynamic_rotate %318 by %c32_i32_140 dim 1 : vector<8x128xf32>, i32 -> vector<8x128xf32>
    %322 = arith.mulf %319, %279 : vector<8x128xf32>
    %323 = arith.mulf %318, %321 : vector<8x128xf32>
    %324 = arith.addf %322, %323 : vector<8x128xf32>
    %325 = math.tanh %324 : vector<8x128xf32>
    %326 = arith.mulf %320, %325 : vector<8x128xf32>
    %327 = arith.index_cast %285 : i32 to index
    %c0_141 = arith.constant 0 : index
    %328 = vector.load %arg4[%327, %c0_141] : memref<64x128xf32, #tpu.memory_space<vmem>>, vector<8x128xf32>
    tpu.vector_store %arg4[%327, %c0_141], %326 {strides = array<i32>} : memref<64x128xf32, #tpu.memory_space<vmem>>, vector<8x128xf32>,
    %c7_i32 = arith.constant 7 : i32
    %c8_i32_142 = arith.constant 8 : i32
    %329 = arith.muli %c7_i32, %c8_i32_142 : i32
    %330 = tpu.assume_multiple %329, 8 : i32
    %331 = arith.index_cast %330 : i32 to index
    %c0_143 = arith.constant 0 : index
    %332 = vector.load %arg3[%331, %c0_143] : memref<64x128xf32, #tpu.memory_space<vmem>>, vector<8x128xf32>
    %c8_144 = arith.constant 8 : index
    %c0_145 = arith.constant 0 : index
    %333 = vector.load %arg1[%c8_144, %c0_145] : memref<544x128xf32, #tpu.memory_space<vmem>>, vector<128x128xf32>
    %cst_146 = arith.constant dense<0.000000e+00> : vector<8x128xf32>
    %334 = tpu.matmul %305, %333, %cst_146 {dimension_numbers = #tpu.dot_dimension_numbers<[1], [0], [0], [1], [0, 0, 1, 1], [], []>} : vector<8x128xf32>, vector<128x128xf32>, vector<8x128xf32> -> vector<8x128xf32>
    %335 = arith.addf %332, %334 : vector<8x128xf32>
    %336 = arith.negf %335 : vector<8x128xf32>
    %337 = math.exp %336 : vector<8x128xf32>
    %cst_147 = arith.constant 1.000000e+00 : f32
    %338 = vector.broadcast %cst_147 : f32 to vector<8x128xf32>
    %339 = arith.addf %338, %337 : vector<8x128xf32>
    %340 = arith.divf %338, %339 : vector<8x128xf32>
    %341 = math.tanh %335 : vector<8x128xf32>
    %342 = arith.select %12, %340, %341 : vector<8x128xi1>, vector<8x128xf32>
    %c96_i32_148 = arith.constant 96 : i32
    %343 = tpu.dynamic_rotate %342 by %c96_i32_148 dim 1 : vector<8x128xf32>, i32 -> vector<8x128xf32>
    %c64_i32_149 = arith.constant 64 : i32
    %344 = tpu.dynamic_rotate %342 by %c64_i32_149 dim 1 : vector<8x128xf32>, i32 -> vector<8x128xf32>
    %c32_i32_150 = arith.constant 32 : i32
    %345 = tpu.dynamic_rotate %342 by %c32_i32_150 dim 1 : vector<8x128xf32>, i32 -> vector<8x128xf32>
    %346 = arith.mulf %343, %303 : vector<8x128xf32>
    %347 = arith.mulf %342, %345 : vector<8x128xf32>
    %348 = arith.addf %346, %347 : vector<8x128xf32>
    %349 = math.tanh %348 : vector<8x128xf32>
    %350 = arith.mulf %344, %349 : vector<8x128xf32>
    %c136_151 = arith.constant 136 : index
    %c0_152 = arith.constant 0 : index
    %351 = vector.load %arg1[%c136_151, %c0_152] : memref<544x128xf32, #tpu.memory_space<vmem>>, vector<128x128xf32>
    %cst_153 = arith.constant dense<0.000000e+00> : vector<8x128xf32>
    %352 = tpu.matmul %350, %351, %cst_153 {dimension_numbers = #tpu.dot_dimension_numbers<[1], [0], [0], [1], [0, 0, 1, 1], [], []>} : vector<8x128xf32>, vector<128x128xf32>, vector<8x128xf32> -> vector<8x128xf32>
    %c264_154 = arith.constant 264 : index
    %c0_155 = arith.constant 0 : index
    %353 = vector.load %arg1[%c264_154, %c0_155] : memref<544x128xf32, #tpu.memory_space<vmem>>, vector<128x128xf32>
    %cst_156 = arith.constant dense<0.000000e+00> : vector<8x128xf32>
    %354 = tpu.matmul %326, %353, %cst_156 {dimension_numbers = #tpu.dot_dimension_numbers<[1], [0], [0], [1], [0, 0, 1, 1], [], []>} : vector<8x128xf32>, vector<128x128xf32>, vector<8x128xf32> -> vector<8x128xf32>
    %355 = arith.addf %352, %354 : vector<8x128xf32>
    %356 = arith.addf %355, %9 : vector<8x128xf32>
    %357 = arith.negf %356 : vector<8x128xf32>
    %358 = math.exp %357 : vector<8x128xf32>
    %cst_157 = arith.constant 1.000000e+00 : f32
    %359 = vector.broadcast %cst_157 : f32 to vector<8x128xf32>
    %360 = arith.addf %359, %358 : vector<8x128xf32>
    %361 = arith.divf %359, %360 : vector<8x128xf32>
    %362 = math.tanh %356 : vector<8x128xf32>
    %363 = arith.select %12, %361, %362 : vector<8x128xi1>, vector<8x128xf32>
    %c96_i32_158 = arith.constant 96 : i32
    %364 = tpu.dynamic_rotate %363 by %c96_i32_158 dim 1 : vector<8x128xf32>, i32 -> vector<8x128xf32>
    %c64_i32_159 = arith.constant 64 : i32
    %365 = tpu.dynamic_rotate %363 by %c64_i32_159 dim 1 : vector<8x128xf32>, i32 -> vector<8x128xf32>
    %c32_i32_160 = arith.constant 32 : i32
    %366 = tpu.dynamic_rotate %363 by %c32_i32_160 dim 1 : vector<8x128xf32>, i32 -> vector<8x128xf32>
    %367 = arith.mulf %364, %324 : vector<8x128xf32>
    %368 = arith.mulf %363, %366 : vector<8x128xf32>
    %369 = arith.addf %367, %368 : vector<8x128xf32>
    %370 = math.tanh %369 : vector<8x128xf32>
    %371 = arith.mulf %365, %370 : vector<8x128xf32>
    %372 = arith.index_cast %330 : i32 to index
    %c0_161 = arith.constant 0 : index
    %373 = vector.load %arg4[%372, %c0_161] : memref<64x128xf32, #tpu.memory_space<vmem>>, vector<8x128xf32>
    tpu.vector_store %arg4[%372, %c0_161], %371 {strides = array<i32>} : memref<64x128xf32, #tpu.memory_space<vmem>>, vector<8x128xf32>,
    %c8_i32_162 = arith.constant 8 : i32
    %c0_163 = arith.constant 0 : index
    %c0_164 = arith.constant 0 : index
    %374 = vector.load %arg4[%c0_163, %c0_164] : memref<64x128xf32, #tpu.memory_space<vmem>>, vector<64x128xf32>
    %c392 = arith.constant 392 : index
    %c0_165 = arith.constant 0 : index
    %375 = vector.load %arg1[%c392, %c0_165] : memref<544x128xf32, #tpu.memory_space<vmem>>, vector<128x128xf32>
    %cst_166 = arith.constant dense<0.000000e+00> : vector<64x128xf32>
    %376 = tpu.matmul %374, %375, %cst_166 {dimension_numbers = #tpu.dot_dimension_numbers<[1], [0], [0], [1], [0, 0, 1, 1], [], []>} : vector<64x128xf32>, vector<128x128xf32>, vector<64x128xf32> -> vector<64x128xf32>
    %c536 = arith.constant 536 : index
    %c0_167 = arith.constant 0 : index
    %377 = vector.load %arg1[%c536, %c0_167] : memref<544x128xf32, #tpu.memory_space<vmem>>, vector<1x128xf32>
    %378 = vector.broadcast %377 : vector<1x128xf32> to vector<64x128xf32>
    %379 = arith.addf %376, %378 : vector<64x128xf32>
    %c0_168 = arith.constant 0 : index
    %c0_169 = arith.constant 0 : index
    %380 = vector.load %arg2[%c0_168, %c0_169] : memref<64x128xf32, #tpu.memory_space<vmem>>, vector<64x128xf32>
    tpu.vector_store %arg2[%c0_168, %c0_169], %379 {strides = array<i32>} : memref<64x128xf32, #tpu.memory_space<vmem>>, vector<64x128xf32>,
    return
  }
}

</mosaic_0001>

<bundles_post_ra>
// kernel: _clim_lstm_forward_impl.1
= control target key start
LH: loop header
LB: loop body
LE: loop exit
PB: predicated region body
PF: predicated region fallthrough
CT: control target
= control target key end

     0   :  { %7 = vsyncpa [#allocation5], 0  ;;  %s4883_s9 = smov [#allocation4]   ;;  %s5709_s0 = inlined_call_operand.vmem [shape: f32[64,8], index: 0, kind: input, shape index: {}]   ;;  %s5710_s1 = inlined_call_operand.hbm [shape: f32[544,128], index: 1, kind: input, shape index: {}]   ;;  %s5711_s2 = inlined_call_operand.vmem [shape: f32[64,128], index: 2, kind: output, shape index: {}]  }
   0x1   :  { %s15_s10 = sshll.u32 %s4883_s9, 4  ;;  %s4859_s13 = scalar_lea.hbm %s5710_s1, 8704  ;;  %s16_s10 = int_to_ptr.vmem [resolvable:$true] %s15_s10 }
   0x2   :  { %p4860_p0 = scmp.ne.s32.totalorder %s5710_s1, %s4859_s13  ;;  %p4863_p1 = scmp.lt.u32.totalorder %s4859_s13, %s5710_s1 }
   0x4   :  { %p4865_p2 = pnand %p4863_p1, %p4860_p0 }
   0x6   :  { %4868 = shalt.err (!%p4865_p2)
}
   0x7   :  { %s4869_s18 = scalar_lea.vmem %s16_s10, 8704  ;;  %p4874_p4 = scmp.lt.s32.totalorder %s16_s10, %s16_s10 }
   0x8   :  { %p4870_p3 = scmp.ne.s32.totalorder %s16_s10, %s4869_s18  ;;  %p4875_p5 = scmp.lt.s32.totalorder %s4869_s18, %s4869_s18 }
   0xa   :  { %p4876_p6 = por %p4875_p5, %p4874_p4 }
   0xc   :  { %p4877_p7 = pnand %p4876_p6, %p4870_p3 }
   0xe   :  { %4880 = shalt.err (!%p4877_p7)
}
   0xf   :  { %s4884_s19 = smov 128   ;;  %s4885_s20 = smov 8  }
  0x10   :  { %21 = dma.hbm_to_vmem [thread:$0]  %s5710_s1, 8704, %s16_s10, [#allocation5], %s4884_s19, %s4884_s19, %s4885_s20  }
  0x11   :  { %4881 = dma.done.wait [#allocation5], 8704  }
  0x12   :  { %4882 = vsyncadd [#allocation5], 4294958592  ;;  %v4886_v0 = vmov 0.0|0.0   ;;  %vm4887_vm0 = vmmov 0   ;;  %v4888_v1 = vmov 0.0   ;;  %v186_v2 = vld [vmem:[#allocation4 + $0x8] sm:$0xff] }
  0x13   :  { %4112 = vmatprep.subr.bf16.mxu0 %v4886_v0  ;;  %3260 = vmatprep.mubr.msk.f32.mxu0 %vm4887_vm0, %v4888_v1  ;;  %v187_v3 = vld [vmem:[#allocation4 + $0x10] sm:$0xff]  ;;  %v188_v4 = vld [vmem:[#allocation4 + $0x18] sm:$0xff]  ;;  %v189_v6 = vld [vmem:[#allocation4 + $0x20] sm:$0xff]  ;;  %vm39_vm1 = vcmask 64512   ;;  %s4889_s8 = smov 64   ;;  %s4890_s9 = smov 96  }
  0x14   :  { %v4922_v5 = vpack.c.bf16 %v187_v3, %v186_v2  ;;  %v4925_v7 = vpack.c.bf16 %v189_v6, %v188_v4  ;;  %v190_v8 = vld [vmem:[#allocation4 + $0x28] sm:$0xff]  ;;  %v191_v9 = vld [vmem:[#allocation4 + $0x30] sm:$0xff]  ;;  %v33_v10 = vld [vmem:[#allocation4] sm:$0xff]  ;;  %s4891_s12 = smov 32  }
  0x15   :  { %3214 = vmatprep.subr.mxu1 %v33_v10  ;;  %v25_v11 = vld [vmem:[%s5709_s0] sm:$0xff]  ;;  %v26_v12 = vld [vmem:[%s5709_s0 + $0x8] sm:$0xff]  ;;  %v4936_v13 = vpack.c.bf16 %v191_v9, %v190_v8  ;;  %v192_v14 = vld [vmem:[#allocation4 + $0x38] sm:$0xff] }
  0x16   :  { %4114 = vmatpush3.bf16.msra.mxu0 %v4922_v5  ;;  %3215 = vmatpush3.msra.mxu1 %v33_v10  ;;  %v193_v15 = vld [vmem:[#allocation4 + $0x40] sm:$0xff]  ;;  %v194_v17 = vld [vmem:[#allocation4 + $0x48] sm:$0xff]  ;;  %v195_v18 = vld [vmem:[#allocation4 + $0x50] sm:$0xff] }
  0x17   :  { %4115 = vmatprep.subr.bf16.mxu0 %v4886_v0  ;;  %3216 = vmatprep.mubr.msk.f32.mxu1 %vm39_vm1, %v25_v11  ;;  %v4942_v16 = vpack.c.bf16 %v193_v15, %v192_v14  ;;  %v4946_v19 = vpack.c.bf16 %v195_v18, %v194_v17  ;;  %v196_v20 = vld [vmem:[#allocation4 + $0x58] sm:$0xff]  ;;  %v197_v21 = vld [vmem:[#allocation4 + $0x60] sm:$0xff]  ;;  %v198_v23 = vld [vmem:[#allocation4 + $0x68] sm:$0xff]  ;;  %v182_v17 = vlaneseq }
  0x18   :  { %3217 = vmatmul.mubr.msk.f32.vlgmr.msra.gmra.mrb[0].mxu1 %vm39_vm1, %v26_v12  ;;  %4160 = vmatprep.subr.bf16.mxu1 %v4886_v0  ;;  %v4950_v22 = vpack.c.bf16 %v197_v21, %v196_v20  ;;  %v199_v24 = vld [vmem:[#allocation4 + $0x70] sm:$0xff]  ;;  %v200_v26 = vld [vmem:[#allocation4 + $0x78] sm:$0xff]  ;;  %v201_v27 = vld [vmem:[#allocation4 + $0x80] sm:$0xff] }
  0x19   :  { %v4954_v25 = vpack.c.bf16 %v199_v24, %v198_v23  ;;  %v4958_v28 = vpack.c.bf16 %v201_v27, %v200_v26  ;;  %v308_v29 = vld [vmem:[#allocation4 + $0x108] sm:$0xff]  ;;  %v309_v30 = vld [vmem:[#allocation4 + $0x110] sm:$0xff]  ;;  %v310_v31 = vld [vmem:[#allocation4 + $0x118] sm:$0xff]  ;;  %v5040_v23 = vand.u32 127, %v182_v17 }
  0x1a   :  { %4117 = vmatpush3.bf16.msra.mxu0 %v4925_v7  ;;  %v4966_v32 = vpack.c.bf16 %v309_v30, %v308_v29  ;;  %v311_v33 = vld [vmem:[#allocation4 + $0x120] sm:$0xff]  ;;  %v312_v35 = vld [vmem:[#allocation4 + $0x128] sm:$0xff]  ;;  %v313_v36 = vld [vmem:[#allocation4 + $0x130] sm:$0xff] }
  0x1b   :  { %4118 = vmatprep.subr.bf16.mxu0 %v4886_v0  ;;  %v4969_v34 = vpack.c.bf16 %v311_v33, %v310_v31  ;;  %v292_v37 = vld [vmem:[#allocation4 + $0x88] sm:$0xff]  ;;  %v293_v38 = vld [vmem:[#allocation4 + $0x90] sm:$0xff]  ;;  %v294_v40 = vld [vmem:[#allocation4 + $0x98] sm:$0xff]  ;;  %v4975_v42 = vpack.c.bf16 %v313_v36, %v312_v35  ;;  %vm184_vm2 = vcmp.lt.s32.totalorder %v5040_v23, 96 }
  0x1c   :  { %v4972_v39 = vpack.c.bf16 %v293_v38, %v292_v37  ;;  %v295_v41 = vld [vmem:[#allocation4 + $0xa0] sm:$0xff]  ;;  %v314_v43 = vld [vmem:[#allocation4 + $0x138] sm:$0xff]  ;;  %v296_v46 = vld [vmem:[#allocation4 + $0xa8] sm:$0xff] }
  0x1d   :  { %v315_v44 = vld [vmem:[#allocation4 + $0x140] sm:$0xff]  ;;  %v4979_v45 = vpack.c.bf16 %v295_v41, %v294_v40  ;;  %v297_v47 = vld [vmem:[#allocation4 + $0xb0] sm:$0xff]  ;;  %v316_v49 = vld [vmem:[#allocation4 + $0x148] sm:$0xff] }
  0x1e   :  { %4120 = vmatpush3.bf16.msra.mxu0 %v4936_v13  ;;  %4162 = vmatpush3.bf16.msra.mxu1 %v4972_v39  ;;  %v4983_v48 = vpack.c.bf16 %v315_v44, %v314_v43  ;;  %v317_v50 = vld [vmem:[#allocation4 + $0x150] sm:$0xff]  ;;  %v4987_v51 = vpack.c.bf16 %v297_v47, %v296_v46  ;;  %v318_v53 = vld [vmem:[#allocation4 + $0x158] sm:$0xff]  ;;  %v319_v54 = vld [vmem:[#allocation4 + $0x160] sm:$0xff] }
  0x1f   :  { %4121 = vmatprep.subr.bf16.mxu0 %v4886_v0  ;;  %4163 = vmatprep.subr.bf16.mxu1 %v4886_v0  ;;  %v4991_v52 = vpack.c.bf16 %v317_v50, %v316_v49  ;;  %v4997_v55 = vpack.c.bf16 %v319_v54, %v318_v53  ;;  %v320_v56 = vld [vmem:[#allocation4 + $0x168] sm:$0xff]  ;;  %v321_v57 = vld [vmem:[#allocation4 + $0x170] sm:$0xff]  ;;  %v322_v59 = vld [vmem:[#allocation4 + $0x178] sm:$0xff] }
  0x20   :  { %v5001_v58 = vpack.c.bf16 %v321_v57, %v320_v56  ;;  %v323_v60 = vld [vmem:[#allocation4 + $0x180] sm:$0xff]  ;;  %v5031_v2 = vld [vmem:[#allocation4 + $0x208] ss:$0 sm:$0xff]  ;;  %v298_v12 = vld [vmem:[#allocation4 + $0xb8] sm:$0xff] }
  0x21   :  { %v5005_v61 = vpack.c.bf16 %v323_v60, %v322_v59  ;;  %v299_v14 = vld [vmem:[#allocation4 + $0xc0] sm:$0xff]  ;;  %v300_v18 = vld [vmem:[#allocation4 + $0xc8] sm:$0xff]  ;;  %v301_v20 = vld [vmem:[#allocation4 + $0xd0] sm:$0xff] }
  0x22   :  { %4123 = vmatpush3.bf16.msra.mxu0 %v4942_v16  ;;  %4165 = vmatpush3.bf16.msra.mxu1 %v4979_v45  ;;  %v5034_v15 = vpack.c.bf16 %v299_v14, %v298_v12  ;;  %v5038_v21 = vpack.c.bf16 %v301_v20, %v300_v18  ;;  %v27_v24 = vld [vmem:[%s5709_s0 + $0x10] sm:$0xff]  ;;  %v28_v26 = vld [vmem:[%s5709_s0 + $0x18] sm:$0xff]  ;;  %v303_v29 = vld [vmem:[#allocation4 + $0xe0] sm:$0xff] }
  0x23   :  { %4124 = vmatprep.subr.bf16.mxu0 %v4886_v0  ;;  %4166 = vmatprep.subr.bf16.mxu1 %v4886_v0  ;;  %v302_v27 = vld [vmem:[#allocation4 + $0xd8] sm:$0xff]  ;;  %v29_v31 = vld [vmem:[%s5709_s0 + $0x20] sm:$0xff]  ;;  %v304_v33 = vld [vmem:[#allocation4 + $0xe8] sm:$0xff] }
  0x24   :  { %3219 = vmatprep.mubr.msk.f32.mxu1 %vm39_vm1, %v27_v24  ;;  %v5052_v30 = vpack.c.bf16 %v303_v29, %v302_v27  ;;  %v30_v35 = vld [vmem:[%s5709_s0 + $0x28] sm:$0xff]  ;;  %v305_v36 = vld [vmem:[#allocation4 + $0xf0] sm:$0xff]  ;;  %v306_v43 = vld [vmem:[#allocation4 + $0xf8] sm:$0xff] }
  0x25   :  { %3220 = vmatmul.mubr.msk.f32.gmra.mrb[2].mxu1 %vm39_vm1, %v28_v26  ;;  %v5063_v38 = vpack.c.bf16 %v305_v36, %v304_v33  ;;  %v31_v41 = vld [vmem:[%s5709_s0 + $0x30] sm:$0xff]  ;;  %v307_v44 = vld [vmem:[#allocation4 + $0x100] sm:$0xff]  ;;  %v32_v47 = vld [vmem:[%s5709_s0 + $0x38] sm:$0xff] }
  0x26   :  { %4126 = vmatpush3.bf16.msra.mxu0 %v4946_v19  ;;  %4168 = vmatpush3.bf16.msra.mxu1 %v4987_v51  ;;  %v5079_v49 = vpack.c.bf16 %v307_v44, %v306_v43  ;;  %v5141_v17 = vld [vmem:[#allocation4 + $0x210] ss:$0 sm:$0xff] }
  0x27   :  { %4127 = vmatprep.subr.bf16.mxu0 %v4886_v0  ;;  %4169 = vmatprep.subr.bf16.mxu1 %v4886_v0 }
  0x28   :  { %3222 = vmatprep.mubr.msk.f32.mxu1 %vm39_vm1, %v29_v31 }
  0x29   :  { %3223 = vmatmul.mubr.msk.f32.gmra.mrb[4].mxu1 %vm39_vm1, %v30_v35 }
  0x2a   :  { %4129 = vmatpush3.bf16.msra.mxu0 %v4950_v22  ;;  %4171 = vmatpush3.bf16.msra.mxu1 %v5034_v15 }
  0x2b   :  { %4130 = vmatprep.subr.bf16.mxu0 %v4886_v0  ;;  %4172 = vmatprep.subr.bf16.mxu1 %v4886_v0 }
  0x2c   :  { %3225 = vmatprep.mubr.msk.f32.mxu1 %vm39_vm1, %v31_v41 }
  0x2d   :  { %3226 = vmatmul.mubr.msk.f32.gmra.mrb[6].mxu1 %vm39_vm1, %v32_v47 }
  0x2e   :  { %4132 = vmatpush3.bf16.msra.mxu0 %v4954_v25  ;;  %4174 = vmatpush3.bf16.msra.mxu1 %v5038_v21 }
  0x2f   :  { %4133 = vmatprep.subr.bf16.mxu0 %v4886_v0  ;;  %4175 = vmatprep.subr.bf16.mxu1 %v4886_v0 }
  0x30   :  { %3330 = vmatprep.mubr.msk.f32.mxu1 %vm4887_vm0, %v4888_v1 }
  0x32   :  { %4135 = vmatpush3.bf16.msra.mxu0 %v4958_v28  ;;  %4177 = vmatpush3.bf16.msra.mxu1 %v5052_v30 }
  0x33   :  { %4136 = vmatprep.subr.bf16.mxu0 %v4886_v0  ;;  %4178 = vmatprep.subr.bf16.mxu1 %v4886_v0 }
  0x35   :  { %3261 = vmatmul.mubr.f32.vlgmr.msra.gmra.mrb[0].mxu0 %v4888_v1 }
  0x36   :  { %3295 = vmatprep.mubr.msk.f32.mxu0 %vm4887_vm0, %v4888_v1  ;;  %4138 = vmatpush3.bf16.msra.mxu0 %v4966_v32 }
  0x37   :  { %4139 = vmatprep.subr.bf16.mxu0 %v4886_v0  ;;  %4180 = vmatpush3.bf16.msra.mxu1 %v5063_v38 }
  0x38   :  { %4181 = vmatprep.subr.bf16.mxu1 %v4886_v0 }
  0x3a   :  { %4141 = vmatpush3.bf16.msra.mxu0 %v4969_v34 }
  0x3b   :  { %4142 = vmatprep.subr.bf16.mxu0 %v4886_v0  ;;  %4183 = vmatpush3.bf16.msra.mxu1 %v5079_v49 }
  0x3c   :  { %4208 = vmatprep.subr.bf16.mxu1 %v4886_v0 }
  0x3e   :  { %4144 = vmatpush3.bf16.msra.mxu0 %v4975_v42 }
  0x3f   :  { %4145 = vmatprep.subr.bf16.mxu0 %v4886_v0 }
  0x42   :  { %4147 = vmatpush3.bf16.msra.mxu0 %v4983_v48 }
  0x43   :  { %4148 = vmatprep.subr.bf16.mxu0 %v4886_v0 }
  0x46   :  { %4150 = vmatpush3.bf16.msra.mxu0 %v4991_v52 }
  0x47   :  { %4151 = vmatprep.subr.bf16.mxu0 %v4886_v0 }
  0x4a   :  { %4153 = vmatpush3.bf16.msra.mxu0 %v4997_v55 }
  0x4b   :  { %4154 = vmatprep.subr.bf16.mxu0 %v4886_v0 }
  0x4e   :  { %4156 = vmatpush3.bf16.msra.mxu0 %v5001_v58 }
  0x4f   :  { %4157 = vmatprep.subr.bf16.mxu0 %v4886_v0 }
  0x52   :  { %4159 = vmatpush3.bf16.msra.mxu0 %v5005_v61 }
  0x53   :  { %4184 = vmatprep.subr.bf16.mxu0 %v4886_v0 }
  0x55   :  { %3296 = vmatmul.mubr.f32.vlgmr.msra.gmra.mrb[2].mxu0 %v4888_v1 }
  0x56   :  { %4186 = vmatpush3.bf16.msra.mxu0 %v4922_v5  ;;  %3365 = vmatprep.mubr.msk.f32.mxu0 %vm4887_vm0, %v4888_v1 }
  0x57   :  { %4187 = vmatprep.subr.bf16.mxu0 %v4886_v0 }
  0x5a   :  { %4189 = vmatpush3.bf16.msra.mxu0 %v4925_v7 }
  0x5b   :  { %4190 = vmatprep.subr.bf16.mxu0 %v4886_v0 }
  0x5e   :  { %4192 = vmatpush3.bf16.msra.mxu0 %v4936_v13 }
  0x5f   :  { %4193 = vmatprep.subr.bf16.mxu0 %v4886_v0 }
  0x62   :  { %4195 = vmatpush3.bf16.msra.mxu0 %v4942_v16 }
  0x63   :  { %4196 = vmatprep.subr.bf16.mxu0 %v4886_v0 }
  0x66   :  { %4198 = vmatpush3.bf16.msra.mxu0 %v4946_v19 }
  0x67   :  { %4199 = vmatprep.subr.bf16.mxu0 %v4886_v0 }
  0x6a   :  { %4201 = vmatpush3.bf16.msra.mxu0 %v4950_v22 }
  0x6b   :  { %4202 = vmatprep.subr.bf16.mxu0 %v4886_v0 }
  0x6e   :  { %4204 = vmatpush3.bf16.msra.mxu0 %v4954_v25 }
  0x6f   :  { %4205 = vmatprep.subr.bf16.mxu0 %v4886_v0 }
  0x72   :  { %4207 = vmatpush3.bf16.msra.mxu0 %v4958_v28 }
  0x73   :  { %4232 = vmatprep.subr.bf16.mxu0 %v4886_v0 }
  0xeb   :  { %v5029_v62 = vpop.f32.mrb[0].mxu1 }
  0xec   :  { %v130_v63 = vpop.f32.mrb[1].mxu1  ;;  %v136_v14 = vadd.f32 %v5029_v62, %v5031_v2 }
  0xed   :  { %v131_v3 = vadd.f32 %v5031_v2, %v130_v63 }
 0x108   :  { %v268_v4 = vpop.f32.mrb[0].mxu0 }
 0x109   :  { %v272_v6 = vadd.f32 %v268_v4, %v131_v3  ;;  %v3262_v8 = vpop.f32.mrb[1].mxu0 }
 0x10b   :  { %v2756_v9 = vmul.f32 -1.442695, %v272_v6 }
 0x10d   :  { %4729 = vpow2.f32 %v2756_v9 }
 0x10e   :  { %4731 = vtanh.f32 %v272_v6  ;;  %v5127_v6 = vpop.f32.mrb[2].mxu1 }
 0x10f   :  { %v5129_v8 = vpop.f32.mrb[3].mxu1 }
 0x110   :  { %v5131_v9 = vpop.f32.mrb[4].mxu1 }
 0x117   :  { %v4730_v10 = vpop.eup %4729 }
 0x118   :  { %v276_v11 = vadd.f32 1.0, %v4730_v10  ;;  %v4732_v37 = vpop.eup %4731  ;;  %v5133_v10 = vpop.f32.mrb[5].mxu1 }
 0x11a   :  { %4733 = vrcp.f32 %v276_v11  ;;  %v5135_v11 = vpop.f32.mrb[6].mxu1 }
 0x11b   :  { %v5137_v12 = vpop.f32.mrb[7].mxu1 }
 0x124   :  { %v4734_v40 = vpop.eup %4733 }
 0x125   :  { %v280_v46 = vsel %vm184_vm2, %v4734_v40, %v4732_v37 }
 0x126   :  { %283 = vrot.lane.b32.xlu1 %v280_v46, %s4889_s8  ;;  %281 = vrot.lane.b32.xlu0 %v280_v46, %s4890_s9 }
 0x128   :  { %v390_v59 = vpop.f32.mrb[2].mxu0 }
 0x129   :  { %v3297_v60 = vpop.f32.mrb[3].mxu0 }
 0x12a   :  { %285 = vrot.lane.b32.xlu0 %v280_v46, %s4891_s12 }
 0x198   :  { %v282_v50 = vpop.permute.xlu0 %281  ;;  %v284_v3 = vpop.permute.xlu1 %283 }
 0x199   :  { %v287_v54 = vmul.f32 0.0, %v282_v50 }
 0x19c   :  { %v286_v53 = vpop.permute.xlu0 %285 }
 0x19d   :  { %v288_v56 = vmul.f32 %v286_v53, %v280_v46 }
 0x19f   :  { %v5088_v57 = vadd.f32 %v288_v56, %v287_v54 }
 0x1a1   :  { %4735 = vtanh.f32 %v5088_v57 }
 0x1ab   :  { %v4736_v63 = vpop.eup %4735 }
 0x1ac   :  { %v291_v4 = vmul.f32 %v4736_v63, %v284_v3 }
 0x1ae   :  { %3331 = vmatmul.mubr.f32.vlgmr.msra.gmra.mrb[8].mxu1 %v291_v4  ;;  %3366 = vmatmul.mubr.f32.vlgmr.msra.gmra.mrb[4].mxu0 %v291_v4 }
 0x1af   :  { %4210 = vmatpush3.bf16.msra.mxu1 %v4966_v32  ;;  %4234 = vmatpush3.bf16.msra.mxu0 %v4972_v39 }
 0x1b0   :  { %4211 = vmatprep.subr.bf16.mxu1 %v4886_v0  ;;  %4235 = vmatprep.subr.bf16.mxu0 %v4886_v0 }
 0x1b1   :  { %3400 = vmatprep.mubr.msk.f32.mxu1 %vm4887_vm0, %v4888_v1  ;;  %3435 = vmatprep.mubr.msk.f32.mxu0 %vm4887_vm0, %v4888_v1 }
 0x1b3   :  { %4213 = vmatpush3.bf16.msra.mxu1 %v4969_v34  ;;  %4237 = vmatpush3.bf16.msra.mxu0 %v4979_v45 }
 0x1b4   :  { %4214 = vmatprep.subr.bf16.mxu1 %v4886_v0  ;;  %4238 = vmatprep.subr.bf16.mxu0 %v4886_v0 }
 0x1b7   :  { %4216 = vmatpush3.bf16.msra.mxu1 %v4975_v42  ;;  %4240 = vmatpush3.bf16.msra.mxu0 %v4987_v51 }
 0x1b8   :  { %4217 = vmatprep.subr.bf16.mxu1 %v4886_v0  ;;  %4241 = vmatprep.subr.bf16.mxu0 %v4886_v0 }
 0x1bb   :  { %4219 = vmatpush3.bf16.msra.mxu1 %v4983_v48  ;;  %4243 = vmatpush3.bf16.msra.mxu0 %v5034_v15 }
 0x1bc   :  { %4220 = vmatprep.subr.bf16.mxu1 %v4886_v0  ;;  %4244 = vmatprep.subr.bf16.mxu0 %v4886_v0 }
 0x1bf   :  { %4222 = vmatpush3.bf16.msra.mxu1 %v4991_v52  ;;  %4246 = vmatpush3.bf16.msra.mxu0 %v5038_v21 }
 0x1c0   :  { %4223 = vmatprep.subr.bf16.mxu1 %v4886_v0  ;;  %4247 = vmatprep.subr.bf16.mxu0 %v4886_v0 }
 0x1c3   :  { %4225 = vmatpush3.bf16.msra.mxu1 %v4997_v55  ;;  %4249 = vmatpush3.bf16.msra.mxu0 %v5052_v30 }
 0x1c4   :  { %4226 = vmatprep.subr.bf16.mxu1 %v4886_v0  ;;  %4250 = vmatprep.subr.bf16.mxu0 %v4886_v0 }
 0x1c7   :  { %4228 = vmatpush3.bf16.msra.mxu1 %v5001_v58  ;;  %4252 = vmatpush3.bf16.msra.mxu0 %v5063_v38 }
 0x1c8   :  { %4229 = vmatprep.subr.bf16.mxu1 %v4886_v0  ;;  %4253 = vmatprep.subr.bf16.mxu0 %v4886_v0 }
 0x1cb   :  { %4231 = vmatpush3.bf16.msra.mxu1 %v5005_v61  ;;  %4255 = vmatpush3.bf16.msra.mxu0 %v5079_v49 }
 0x1cc   :  { %4256 = vmatprep.subr.bf16.mxu1 %v4886_v0  ;;  %4280 = vmatprep.subr.bf16.mxu0 %v4886_v0 }
 0x281   :  { %v460_v18 = vpop.f32.mrb[8].mxu1  ;;  %v569_v20 = vpop.f32.mrb[4].mxu0 }
 0x282   :  { %v461_v24 = vadd.f32 %v460_v18, %v390_v59  ;;  %v573_v26 = vadd.f32 %v569_v20, %v136_v14  ;;  %v3332_v27 = vpop.f32.mrb[9].mxu1  ;;  %v3367_v29 = vpop.f32.mrb[5].mxu0 }
 0x284   :  { %v464_v31 = vadd.f32 %v5141_v17, %v461_v24  ;;  %v2758_v33 = vmul.f32 -1.442695, %v573_v26 }
 0x286   :  { %v2757_v35 = vmul.f32 -1.442695, %v464_v31  ;;  %4737 = vpow2.f32 %v2758_v33 }
 0x288   :  { %4739 = vpow2.f32 %v2757_v35 }
 0x289   :  { %4741 = vtanh.f32 %v464_v31 }
 0x290   :  { %v4738_v36 = vpop.eup %4737 }
 0x291   :  { %v577_v41 = vadd.f32 1.0, %v4738_v36 }
 0x292   :  { %v4740_v37 = vpop.eup %4739 }
 0x293   :  { %v468_v40 = vadd.f32 1.0, %v4740_v37  ;;  %v4742_v62 = vpop.eup %4741 }
 0x295   :  { %4743 = vrcp.f32 %v468_v40 }
 0x296   :  { %4745 = vrcp.f32 %v577_v41 }
 0x297   :  { %4747 = vtanh.f32 %v573_v26 }
 0x29f   :  { %v4744_v43 = vpop.eup %4743 }
 0x2a0   :  { %v472_v44 = vsel %vm184_vm2, %v4744_v43, %v4742_v62  ;;  %v4746_v46 = vpop.eup %4745 }
 0x2a1   :  { %477 = vrot.lane.b32.xlu0 %v472_v44, %s4891_s12  ;;  %473 = vrot.lane.b32.xlu1 %v472_v44, %s4890_s9  ;;  %v4748_v47 = vpop.eup %4747 }
 0x2a2   :  { %v581_v50 = vsel %vm184_vm2, %v4746_v46, %v4748_v47 }
 0x2a5   :  { %586 = vrot.lane.b32.xlu0 %v581_v50, %s4891_s12  ;;  %582 = vrot.lane.b32.xlu1 %v581_v50, %s4890_s9 }
 0x2a9   :  { %584 = vrot.lane.b32.xlu0 %v581_v50, %s4889_s8  ;;  %475 = vrot.lane.b32.xlu1 %v472_v44, %s4889_s8 }
 0x313   :  { %v478_v53 = vpop.permute.xlu0 %477  ;;  %v474_v54 = vpop.permute.xlu1 %473 }
 0x314   :  { %v480_v56 = vmul.f32 %v478_v53, %v472_v44  ;;  %v479_v59 = vmul.f32 0.0, %v474_v54 }
 0x316   :  { %v5154_v60 = vadd.f32 %v480_v56, %v479_v59  ;;  %v1097_v59 = vld [vmem:[#allocation4 + $0x38] sm:$0xff] }
 0x317   :  { %v587_v63 = vpop.permute.xlu0 %586  ;;  %v583_v3 = vpop.permute.xlu1 %582 }
 0x318   :  { %4749 = vtanh.f32 %v5154_v60  ;;  %v589_v4 = vmul.f32 %v587_v63, %v581_v50  ;;  %v588_v14 = vmul.f32 %v583_v3, %v5088_v57 }
 0x31a   :  { %v5158_v18 = vadd.f32 %v589_v4, %v588_v14 }
 0x31b   :  { %v476_v24 = vpop.permute.xlu1 %475  ;;  %v585_v29 = vpop.permute.xlu0 %584 }
 0x31c   :  { %4751 = vtanh.f32 %v5158_v18 }
 0x322   :  { %v4750_v20 = vpop.eup %4749 }
 0x323   :  { %v5161_v26 = vmul.f32 %v4750_v20, %v476_v24  ;;  %v1100_v24 = vld [vmem:[#allocation4 + $0x50] sm:$0xff] }
 0x325   :  { %3401 = vmatmul.mubr.f32.vlgmr.msra.gmra.mrb[10].mxu1 %v5161_v26 }
 0x326   :  { %v4752_v27 = vpop.eup %4751  ;;  %4258 = vmatpush3.bf16.msra.mxu1 %v4922_v5  ;;  %3470 = vmatprep.mubr.msk.f32.mxu1 %vm4887_vm0, %v4888_v1 }
 0x327   :  { %v592_v31 = vmul.f32 %v4752_v27, %v585_v29  ;;  %4259 = vmatprep.subr.bf16.mxu1 %v4886_v0  ;;  %v1101_v29 = vld [vmem:[#allocation4 + $0x58] sm:$0xff] }
 0x329   :  { %3436 = vmatmul.mubr.f32.vlgmr.msra.gmra.mrb[6].mxu0 %v592_v31 }
 0x32a   :  { %4261 = vmatpush3.bf16.msra.mxu1 %v4925_v7  ;;  %4282 = vmatpush3.bf16.msra.mxu0 %v4966_v32 }
 0x32b   :  { %4262 = vmatprep.subr.bf16.mxu1 %v4886_v0  ;;  %4283 = vmatprep.subr.bf16.mxu0 %v4886_v0 }
 0x32c   :  { %3505 = vmatprep.mubr.msk.f32.mxu0 %vm4887_vm0, %v4888_v1 }
 0x32e   :  { %4264 = vmatpush3.bf16.msra.mxu1 %v4936_v13  ;;  %4285 = vmatpush3.bf16.msra.mxu0 %v4969_v34 }
 0x32f   :  { %4265 = vmatprep.subr.bf16.mxu1 %v4886_v0  ;;  %4286 = vmatprep.subr.bf16.mxu0 %v4886_v0 }
 0x332   :  { %4267 = vmatpush3.bf16.msra.mxu1 %v4942_v16  ;;  %4288 = vmatpush3.bf16.msra.mxu0 %v4975_v42 }
 0x333   :  { %4268 = vmatprep.subr.bf16.mxu1 %v4886_v0  ;;  %4289 = vmatprep.subr.bf16.mxu0 %v4886_v0 }
 0x336   :  { %4270 = vmatpush3.bf16.msra.mxu1 %v4946_v19  ;;  %4291 = vmatpush3.bf16.msra.mxu0 %v4983_v48 }
 0x337   :  { %4271 = vmatprep.subr.bf16.mxu1 %v4886_v0  ;;  %4292 = vmatprep.subr.bf16.mxu0 %v4886_v0 }
 0x33a   :  { %4273 = vmatpush3.bf16.msra.mxu1 %v4950_v22  ;;  %4294 = vmatpush3.bf16.msra.mxu0 %v4991_v52  ;;  %v141_v52 = vadd.f32 %v5031_v2, %v5129_v8 }
 0x33b   :  { %4274 = vmatprep.subr.bf16.mxu1 %v4886_v0  ;;  %4295 = vmatprep.subr.bf16.mxu0 %v4886_v0 }
 0x33e   :  { %4276 = vmatpush3.bf16.msra.mxu1 %v4954_v25  ;;  %4297 = vmatpush3.bf16.msra.mxu0 %v4997_v55 }
 0x33f   :  { %4277 = vmatprep.subr.bf16.mxu1 %v4886_v0  ;;  %4298 = vmatprep.subr.bf16.mxu0 %v4886_v0 }
 0x342   :  { %4279 = vmatpush3.bf16.msra.mxu1 %v4958_v28  ;;  %4300 = vmatpush3.bf16.msra.mxu0 %v5001_v58 }
 0x343   :  { %4304 = vmatprep.subr.bf16.mxu1 %v4886_v0  ;;  %4301 = vmatprep.subr.bf16.mxu0 %v4886_v0 }
 0x345   :  { %3471 = vmatmul.mubr.f32.vlgmr.msra.gmra.mrb[12].mxu1 %v592_v31  ;;  %v1103_v31 = vld [vmem:[#allocation4 + $0x68] sm:$0xff] }
 0x346   :  { %4306 = vmatpush3.bf16.msra.mxu1 %v4972_v39  ;;  %4303 = vmatpush3.bf16.msra.mxu0 %v5005_v61 }
 0x347   :  { %4307 = vmatprep.subr.bf16.mxu1 %v4886_v0  ;;  %4328 = vmatprep.subr.bf16.mxu0 %v4886_v0 }
 0x348   :  { %3540 = vmatprep.mubr.msk.f32.mxu1 %vm4887_vm0, %v4888_v1 }
 0x34a   :  { %4309 = vmatpush3.bf16.msra.mxu1 %v4979_v45 }
 0x34b   :  { %4310 = vmatprep.subr.bf16.mxu1 %v4886_v0 }
 0x34e   :  { %4312 = vmatpush3.bf16.msra.mxu1 %v4987_v51 }
 0x34f   :  { %4313 = vmatprep.subr.bf16.mxu1 %v4886_v0 }
 0x352   :  { %4315 = vmatpush3.bf16.msra.mxu1 %v5034_v15 }
 0x353   :  { %4316 = vmatprep.subr.bf16.mxu1 %v4886_v0 }
 0x356   :  { %4318 = vmatpush3.bf16.msra.mxu1 %v5038_v21 }
 0x357   :  { %4319 = vmatprep.subr.bf16.mxu1 %v4886_v0 }
 0x35a   :  { %4321 = vmatpush3.bf16.msra.mxu1 %v5052_v30 }
 0x35b   :  { %4322 = vmatprep.subr.bf16.mxu1 %v4886_v0 }
 0x35e   :  { %4324 = vmatpush3.bf16.msra.mxu1 %v5063_v38 }
 0x35f   :  { %4325 = vmatprep.subr.bf16.mxu1 %v4886_v0 }
 0x362   :  { %4327 = vmatpush3.bf16.msra.mxu1 %v5079_v49 }
 0x363   :  { %4352 = vmatprep.subr.bf16.mxu1 %v4886_v0 }
 0x3f8   :  { %v691_v16 = vpop.f32.mrb[10].mxu1 }
 0x3f9   :  { %v3402_v19 = vpop.f32.mrb[11].mxu1 }
 0x3fc   :  { %v761_v22 = vpop.f32.mrb[6].mxu0 }
 0x3fd   :  { %v762_v25 = vadd.f32 %v761_v22, %v691_v16  ;;  %v3437_v28 = vpop.f32.mrb[7].mxu0  ;;  %v1104_v16 = vld [vmem:[#allocation4 + $0x70] sm:$0xff]  ;;  %v1105_v22 = vld [vmem:[#allocation4 + $0x78] sm:$0xff] }
 0x3fe   :  { %v5261_v19 = vpack.c.bf16 %v1104_v16, %v1103_v31  ;;  %v1228_v31 = vld [vmem:[#allocation4 + $0x180] sm:$0xff] }
 0x3ff   :  { %v765_v32 = vadd.f32 %v5141_v17, %v762_v25  ;;  %v1106_v25 = vld [vmem:[#allocation4 + $0x80] sm:$0xff] }
 0x401   :  { %v2759_v34 = vmul.f32 -1.442695, %v765_v32 }
 0x403   :  { %4753 = vpow2.f32 %v2759_v34 }
 0x404   :  { %4755 = vtanh.f32 %v765_v32 }
 0x40d   :  { %v4754_v42 = vpop.eup %4753 }
 0x40e   :  { %v769_v48 = vadd.f32 1.0, %v4754_v42  ;;  %v4756_v58 = vpop.eup %4755  ;;  %v5265_v42 = vpack.c.bf16 %v1106_v25, %v1105_v22 }
 0x410   :  { %4757 = vrcp.f32 %v769_v48 }
 0x418   :  { %v871_v55 = vpop.f32.mrb[12].mxu1 }
 0x419   :  { %v875_v61 = vadd.f32 %v871_v55, %v141_v52  ;;  %v3472_v57 = vpop.f32.mrb[13].mxu1  ;;  %v1220_v55 = vld [vmem:[#allocation4 + $0x140] sm:$0xff] }
 0x41a   :  { %v4758_v33 = vpop.eup %4757 }
 0x41b   :  { %v2760_v35 = vmul.f32 -1.442695, %v875_v61  ;;  %v773_v36 = vsel %vm184_vm2, %v4758_v33, %v4756_v58 }
 0x41c   :  { %778 = vrot.lane.b32.xlu0 %v773_v36, %s4891_s12  ;;  %774 = vrot.lane.b32.xlu1 %v773_v36, %s4890_s9 }
 0x41d   :  { %4759 = vpow2.f32 %v2760_v35 }
 0x41e   :  { %4761 = vtanh.f32 %v875_v61 }
 0x420   :  { %776 = vrot.lane.b32.xlu1 %v773_v36, %s4889_s8 }
 0x427   :  { %v4760_v37 = vpop.eup %4759 }
 0x428   :  { %v879_v40 = vadd.f32 1.0, %v4760_v37  ;;  %v4762_v8 = vpop.eup %4761 }
 0x42a   :  { %4763 = vrcp.f32 %v879_v40  ;;  %v146_v40 = vadd.f32 %v5127_v6, %v5031_v2  ;;  %v1223_v6 = vld [vmem:[#allocation4 + $0x158] sm:$0xff] }
 0x434   :  { %v4764_v41 = vpop.eup %4763 }
 0x435   :  { %v883_v62 = vsel %vm184_vm2, %v4764_v41, %v4762_v8 }
 0x436   :  { %888 = vrot.lane.b32.xlu1 %v883_v62, %s4891_s12  ;;  %884 = vrot.lane.b32.xlu0 %v883_v62, %s4890_s9 }
 0x43a   :  { %886 = vrot.lane.b32.xlu0 %v883_v62, %s4889_s8 }
 0x48e   :  { %v779_v43 = vpop.permute.xlu0 %778  ;;  %v775_v44 = vpop.permute.xlu1 %774 }
 0x48f   :  { %v781_v46 = vmul.f32 %v779_v43, %v773_v36  ;;  %v780_v47 = vmul.f32 %v775_v44, %v5154_v60  ;;  %v1098_v60 = vld [vmem:[#allocation4 + $0x40] sm:$0xff] }
 0x490   :  { %v5246_v20 = vpack.c.bf16 %v1098_v60, %v1097_v59 }
 0x491   :  { %v5232_v50 = vadd.f32 %v781_v46, %v780_v47  ;;  %v1221_v47 = vld [vmem:[#allocation4 + $0x148] sm:$0xff] }
 0x492   :  { %v777_v54 = vpop.permute.xlu1 %776 }
 0x493   :  { %4765 = vtanh.f32 %v5232_v50 }
 0x49d   :  { %v4766_v53 = vpop.eup %4765 }
 0x49e   :  { %v5235_v56 = vmul.f32 %v4766_v53, %v777_v54  ;;  %v1222_v53 = vld [vmem:[#allocation4 + $0x150] sm:$0xff] }
 0x49f   :  { %v5309_v59 = vpack.c.bf16 %v1222_v53, %v1221_v47  ;;  %v1398_v47 = vld [vmem:[#allocation4 + $0x30] sm:$0xff] }
 0x4a0   :  { %3506 = vmatmul.mubr.f32.vlgmr.msra.gmra.mrb[8].mxu0 %v5235_v56 }
 0x4a1   :  { %4330 = vmatpush3.bf16.msra.mxu0 %v4922_v5  ;;  %3575 = vmatprep.mubr.msk.f32.mxu0 %vm4887_vm0, %v4888_v1  ;;  %v1099_v5 = vld [vmem:[#allocation4 + $0x48] sm:$0xff] }
 0x4a2   :  { %4331 = vmatprep.subr.bf16.mxu0 %v4886_v0 }
 0x4a5   :  { %4333 = vmatpush3.bf16.msra.mxu0 %v4925_v7  ;;  %v5253_v7 = vpack.c.bf16 %v1100_v24, %v1099_v5  ;;  %v1226_v5 = vld [vmem:[#allocation4 + $0x170] sm:$0xff] }
 0x4a6   :  { %4334 = vmatprep.subr.bf16.mxu0 %v4886_v0 }
 0x4a8   :  { %v889_v63 = vpop.permute.xlu1 %888  ;;  %v885_v3 = vpop.permute.xlu0 %884 }
 0x4a9   :  { %v891_v4 = vmul.f32 %v889_v63, %v883_v62  ;;  %v890_v14 = vmul.f32 %v885_v3, %v5158_v18  ;;  %4336 = vmatpush3.bf16.msra.mxu0 %v4936_v13  ;;  %v1102_v18 = vld [vmem:[#allocation4 + $0x60] sm:$0xff] }
 0x4aa   :  { %4337 = vmatprep.subr.bf16.mxu0 %v4886_v0  ;;  %v5257_v13 = vpack.c.bf16 %v1102_v18, %v1101_v29  ;;  %v1224_v63 = vld [vmem:[#allocation4 + $0x160] sm:$0xff]  ;;  %v1227_v18 = vld [vmem:[#allocation4 + $0x178] sm:$0xff] }
 0x4ab   :  { %v5249_v27 = vadd.f32 %v891_v4, %v890_v14  ;;  %v5313_v4 = vpack.c.bf16 %v1224_v63, %v1223_v6  ;;  %v1225_v14 = vld [vmem:[#allocation4 + $0x168] sm:$0xff]  ;;  %v5321_v22 = vpack.c.bf16 %v1228_v31, %v1227_v18  ;;  %v151_v31 = vadd.f32 %v5031_v2, %v5133_v10  ;;  %v1501_v2 = vld [vmem:[#allocation4 + $0x98] sm:$0xff]  ;;  %v1502_v10 = vld [vmem:[#allocation4 + $0xa0] sm:$0xff] }
 0x4ac   :  { %v887_v32 = vpop.permute.xlu0 %886  ;;  %v5317_v24 = vpack.c.bf16 %v1226_v5, %v1225_v14 }
 0x4ad   :  { %4767 = vtanh.f32 %v5249_v27  ;;  %4339 = vmatpush3.bf16.msra.mxu0 %v5246_v20 }
 0x4ae   :  { %4340 = vmatprep.subr.bf16.mxu0 %v4886_v0 }
 0x4b1   :  { %4342 = vmatpush3.bf16.msra.mxu0 %v5253_v7 }
 0x4b2   :  { %4343 = vmatprep.subr.bf16.mxu0 %v4886_v0 }
 0x4b5   :  { %4345 = vmatpush3.bf16.msra.mxu0 %v5257_v13 }
 0x4b6   :  { %4346 = vmatprep.subr.bf16.mxu0 %v4886_v0 }
 0x4b7   :  { %v4768_v28 = vpop.eup %4767 }
 0x4b8   :  { %v894_v34 = vmul.f32 %v4768_v28, %v887_v32 }
 0x4b9   :  { %4348 = vmatpush3.bf16.msra.mxu0 %v5261_v19 }
 0x4ba   :  { %3541 = vmatmul.mubr.f32.vlgmr.msra.gmra.mrb[14].mxu1 %v894_v34  ;;  %4349 = vmatprep.subr.bf16.mxu0 %v4886_v0 }
 0x4bb   :  { %3610 = vmatprep.mubr.msk.f32.mxu1 %vm4887_vm0, %v4888_v1 }
 0x4bd   :  { %4351 = vmatpush3.bf16.msra.mxu0 %v5265_v42 }
 0x4be   :  { %4376 = vmatprep.subr.bf16.mxu0 %v4886_v0 }
 0x4c0   :  { %3576 = vmatmul.mubr.f32.vlgmr.msra.gmra.mrb[10].mxu0 %v894_v34 }
 0x4c1   :  { %4378 = vmatpush3.bf16.msra.mxu0 %v4972_v39  ;;  %3645 = vmatprep.mubr.msk.f32.mxu0 %vm4887_vm0, %v4888_v1  ;;  %v1213_v39 = vld [vmem:[#allocation4 + $0x108] sm:$0xff] }
 0x4c2   :  { %4379 = vmatprep.subr.bf16.mxu0 %v4886_v0 }
 0x4c5   :  { %4381 = vmatpush3.bf16.msra.mxu0 %v4979_v45  ;;  %v1214_v45 = vld [vmem:[#allocation4 + $0x110] sm:$0xff] }
 0x4c6   :  { %4382 = vmatprep.subr.bf16.mxu0 %v4886_v0 }
 0x4c9   :  { %4384 = vmatpush3.bf16.msra.mxu0 %v4987_v51  ;;  %v1215_v51 = vld [vmem:[#allocation4 + $0x118] sm:$0xff] }
 0x4ca   :  { %4385 = vmatprep.subr.bf16.mxu0 %v4886_v0 }
 0x4cd   :  { %4387 = vmatpush3.bf16.msra.mxu0 %v5034_v15  ;;  %v5290_v15 = vpack.c.bf16 %v1214_v45, %v1213_v39 }
 0x4ce   :  { %4388 = vmatprep.subr.bf16.mxu0 %v4886_v0 }
 0x4cf   :  { %4354 = vmatpush3.bf16.msra.mxu1 %v5290_v15 }
 0x4d0   :  { %4355 = vmatprep.subr.bf16.mxu1 %v4886_v0 }
 0x4d1   :  { %4390 = vmatpush3.bf16.msra.mxu0 %v5038_v21  ;;  %v1216_v21 = vld [vmem:[#allocation4 + $0x120] sm:$0xff] }
 0x4d2   :  { %4391 = vmatprep.subr.bf16.mxu0 %v4886_v0  ;;  %v5293_v48 = vpack.c.bf16 %v1216_v21, %v1215_v51 }
 0x4d4   :  { %4357 = vmatpush3.bf16.msra.mxu1 %v5293_v48 }
 0x4d5   :  { %4393 = vmatpush3.bf16.msra.mxu0 %v5052_v30  ;;  %v1217_v30 = vld [vmem:[#allocation4 + $0x128] sm:$0xff]  ;;  %4358 = vmatprep.subr.bf16.mxu1 %v4886_v0 }
 0x4d6   :  { %4394 = vmatprep.subr.bf16.mxu0 %v4886_v0 }
 0x4d9   :  { %4396 = vmatpush3.bf16.msra.mxu0 %v5063_v38  ;;  %v1218_v38 = vld [vmem:[#allocation4 + $0x130] sm:$0xff] }
 0x4da   :  { %4397 = vmatprep.subr.bf16.mxu0 %v4886_v0  ;;  %v5297_v52 = vpack.c.bf16 %v1218_v38, %v1217_v30 }
 0x4dc   :  { %4360 = vmatpush3.bf16.msra.mxu1 %v5297_v52 }
 0x4dd   :  { %4399 = vmatpush3.bf16.msra.mxu0 %v5079_v49  ;;  %v1219_v49 = vld [vmem:[#allocation4 + $0x138] sm:$0xff]  ;;  %4361 = vmatprep.subr.bf16.mxu1 %v4886_v0 }
 0x4de   :  { %4424 = vmatprep.subr.bf16.mxu0 %v4886_v0  ;;  %v5301_v58 = vpack.c.bf16 %v1220_v55, %v1219_v49 }
 0x4e0   :  { %4363 = vmatpush3.bf16.msra.mxu1 %v5301_v58 }
 0x4e1   :  { %4364 = vmatprep.subr.bf16.mxu1 %v4886_v0 }
 0x4e4   :  { %4366 = vmatpush3.bf16.msra.mxu1 %v5309_v59 }
 0x4e5   :  { %4367 = vmatprep.subr.bf16.mxu1 %v4886_v0 }
 0x4e8   :  { %4369 = vmatpush3.bf16.msra.mxu1 %v5313_v4 }
 0x4e9   :  { %4370 = vmatprep.subr.bf16.mxu1 %v4886_v0 }
 0x4ec   :  { %4372 = vmatpush3.bf16.msra.mxu1 %v5317_v24 }
 0x4ed   :  { %4373 = vmatprep.subr.bf16.mxu1 %v4886_v0 }
 0x4f0   :  { %4375 = vmatpush3.bf16.msra.mxu1 %v5321_v22 }
 0x4f1   :  { %4400 = vmatprep.subr.bf16.mxu1 %v4886_v0 }
 0x573   :  { %v993_v61 = vpop.f32.mrb[8].mxu0 }
 0x574   :  { %v3507_v57 = vpop.f32.mrb[9].mxu0 }
 0x58d   :  { %v1063_v33 = vpop.f32.mrb[14].mxu1 }
 0x58e   :  { %v1064_v35 = vadd.f32 %v1063_v33, %v993_v61  ;;  %v3542_v36 = vpop.f32.mrb[15].mxu1  ;;  %v1393_v33 = vld [vmem:[#allocation4 + $0x8] sm:$0xff] }
 0x590   :  { %v1067_v37 = vadd.f32 %v5141_v17, %v1064_v35  ;;  %v1394_v35 = vld [vmem:[#allocation4 + $0x10] sm:$0xff] }
 0x592   :  { %v2761_v8 = vmul.f32 -1.442695, %v1067_v37 }
 0x593   :  { %v1173_v41 = vpop.f32.mrb[10].mxu0 }
 0x594   :  { %4769 = vpow2.f32 %v2761_v8  ;;  %v1177_v62 = vadd.f32 %v1173_v41, %v146_v40  ;;  %v3577_v43 = vpop.f32.mrb[11].mxu0  ;;  %v5343_v40 = vpack.c.bf16 %v1394_v35, %v1393_v33  ;;  %v1395_v8 = vld [vmem:[#allocation4 + $0x18] sm:$0xff]  ;;  %v1396_v41 = vld [vmem:[#allocation4 + $0x20] sm:$0xff] }
 0x595   :  { %v1505_v35 = vld [vmem:[#allocation4 + $0xb8] sm:$0xff] }
 0x596   :  { %v2762_v44 = vmul.f32 -1.442695, %v1177_v62 }
 0x598   :  { %4771 = vpow2.f32 %v2762_v44 }
 0x599   :  { %4773 = vtanh.f32 %v1067_v37 }
 0x59e   :  { %v4770_v46 = vpop.eup %4769 }
 0x59f   :  { %v1071_v54 = vadd.f32 1.0, %v4770_v46  ;;  %v1397_v46 = vld [vmem:[#allocation4 + $0x28] sm:$0xff] }
 0x5a0   :  { %v5355_v53 = vpack.c.bf16 %v1398_v47, %v1397_v46  ;;  %v1509_v46 = vld [vmem:[#allocation4 + $0xd8] sm:$0xff]  ;;  %v1510_v47 = vld [vmem:[#allocation4 + $0xe0] sm:$0xff] }
 0x5a1   :  { %4775 = vrcp.f32 %v1071_v54 }
 0x5a2   :  { %v4772_v60 = vpop.eup %4771  ;;  %4777 = vtanh.f32 %v1177_v62 }
 0x5a3   :  { %v1181_v3 = vadd.f32 1.0, %v4772_v60  ;;  %v4774_v29 = vpop.eup %4773 }
 0x5a5   :  { %4779 = vrcp.f32 %v1181_v3 }
 0x5ab   :  { %v4776_v16 = vpop.eup %4775 }
 0x5ac   :  { %v1075_v25 = vsel %vm184_vm2, %v4776_v16, %v4774_v29  ;;  %v4778_v28 = vpop.eup %4777 }
 0x5ad   :  { %1080 = vrot.lane.b32.xlu0 %v1075_v25, %s4891_s12  ;;  %1076 = vrot.lane.b32.xlu1 %v1075_v25, %s4890_s9 }
 0x5af   :  { %v4780_v32 = vpop.eup %4779 }
 0x5b0   :  { %v1185_v34 = vsel %vm184_vm2, %v4780_v32, %v4778_v28  ;;  %v1500_v28 = vld [vmem:[#allocation4 + $0x90] sm:$0xff] }
 0x5b1   :  { %1190 = vrot.lane.b32.xlu0 %v1185_v34, %s4891_s12  ;;  %1186 = vrot.lane.b32.xlu1 %v1185_v34, %s4890_s9 }
 0x5b5   :  { %1188 = vrot.lane.b32.xlu0 %v1185_v34, %s4889_s8  ;;  %1078 = vrot.lane.b32.xlu1 %v1075_v25, %s4889_s8 }
 0x61f   :  { %v1081_v39 = vpop.permute.xlu0 %1080  ;;  %v1077_v45 = vpop.permute.xlu1 %1076 }
 0x620   :  { %v1083_v51 = vmul.f32 %v1081_v39, %v1075_v25  ;;  %v1082_v21 = vmul.f32 %v1077_v45, %v5232_v50  ;;  %v1499_v25 = vld [vmem:[#allocation4 + $0x88] sm:$0xff] }
 0x621   :  { %v5393_v45 = vpack.c.bf16 %v1500_v28, %v1499_v25 }
 0x622   :  { %v5336_v30 = vadd.f32 %v1083_v51, %v1082_v21 }
 0x623   :  { %v1191_v38 = vpop.permute.xlu0 %1190  ;;  %v1187_v49 = vpop.permute.xlu1 %1186 }
 0x624   :  { %4781 = vtanh.f32 %v5336_v30  ;;  %v1193_v55 = vmul.f32 %v1191_v38, %v1185_v34  ;;  %v1192_v61 = vmul.f32 %v1187_v49, %v5249_v27  ;;  %v5349_v27 = vpack.c.bf16 %v1396_v41, %v1395_v8 }
 0x625   :  { %v5401_v49 = vpack.c.bf16 %v1502_v10, %v1501_v2 }
 0x626   :  { %v5340_v57 = vadd.f32 %v1193_v55, %v1192_v61  ;;  %v1503_v55 = vld [vmem:[#allocation4 + $0xa8] sm:$0xff]  ;;  %v1504_v61 = vld [vmem:[#allocation4 + $0xb0] sm:$0xff] }
 0x627   :  { %v1079_v37 = vpop.permute.xlu1 %1078  ;;  %v1189_v43 = vpop.permute.xlu0 %1188  ;;  %v5406_v33 = vpack.c.bf16 %v1504_v61, %v1503_v55 }
 0x628   :  { %4783 = vtanh.f32 %v5340_v57 }
 0x62e   :  { %v4782_v36 = vpop.eup %4781 }
 0x62f   :  { %v5345_v50 = vmul.f32 %v4782_v36, %v1079_v37  ;;  %v1506_v36 = vld [vmem:[#allocation4 + $0xc0] sm:$0xff] }
 0x630   :  { %v5410_v37 = vpack.c.bf16 %v1506_v36, %v1505_v35 }
 0x631   :  { %3611 = vmatmul.mubr.f32.vlgmr.msra.gmra.mrb[16].mxu1 %v5345_v50 }
 0x632   :  { %v4784_v62 = vpop.eup %4783  ;;  %4402 = vmatpush3.bf16.msra.mxu1 %v5343_v40  ;;  %3680 = vmatprep.mubr.msk.f32.mxu1 %vm4887_vm0, %v4888_v1 }
 0x633   :  { %v1196_v44 = vmul.f32 %v4784_v62, %v1189_v43  ;;  %4403 = vmatprep.subr.bf16.mxu1 %v4886_v0  ;;  %v1507_v62 = vld [vmem:[#allocation4 + $0xc8] sm:$0xff]  ;;  %v1508_v43 = vld [vmem:[#allocation4 + $0xd0] sm:$0xff] }
 0x635   :  { %3646 = vmatmul.mubr.f32.vlgmr.msra.gmra.mrb[12].mxu0 %v1196_v44 }
 0x636   :  { %4405 = vmatpush3.bf16.msra.mxu1 %v5349_v27  ;;  %4426 = vmatpush3.bf16.msra.mxu0 %v5290_v15 }
 0x637   :  { %4406 = vmatprep.subr.bf16.mxu1 %v4886_v0  ;;  %4427 = vmatprep.subr.bf16.mxu0 %v4886_v0 }
 0x638   :  { %3715 = vmatprep.mubr.msk.f32.mxu0 %vm4887_vm0, %v4888_v1 }
 0x63a   :  { %4408 = vmatpush3.bf16.msra.mxu1 %v5355_v53  ;;  %4429 = vmatpush3.bf16.msra.mxu0 %v5293_v48 }
 0x63b   :  { %4409 = vmatprep.subr.bf16.mxu1 %v4886_v0  ;;  %4430 = vmatprep.subr.bf16.mxu0 %v4886_v0 }
 0x63e   :  { %4411 = vmatpush3.bf16.msra.mxu1 %v5246_v20  ;;  %4432 = vmatpush3.bf16.msra.mxu0 %v5297_v52 }
 0x63f   :  { %4412 = vmatprep.subr.bf16.mxu1 %v4886_v0  ;;  %4433 = vmatprep.subr.bf16.mxu0 %v4886_v0 }
 0x642   :  { %4414 = vmatpush3.bf16.msra.mxu1 %v5253_v7  ;;  %4435 = vmatpush3.bf16.msra.mxu0 %v5301_v58 }
 0x643   :  { %4415 = vmatprep.subr.bf16.mxu1 %v4886_v0  ;;  %4436 = vmatprep.subr.bf16.mxu0 %v4886_v0 }
 0x646   :  { %4417 = vmatpush3.bf16.msra.mxu1 %v5257_v13  ;;  %4438 = vmatpush3.bf16.msra.mxu0 %v5309_v59 }
 0x647   :  { %4418 = vmatprep.subr.bf16.mxu1 %v4886_v0  ;;  %4439 = vmatprep.subr.bf16.mxu0 %v4886_v0 }
 0x64a   :  { %4420 = vmatpush3.bf16.msra.mxu1 %v5261_v19  ;;  %4441 = vmatpush3.bf16.msra.mxu0 %v5313_v4 }
 0x64b   :  { %4421 = vmatprep.subr.bf16.mxu1 %v4886_v0  ;;  %4442 = vmatprep.subr.bf16.mxu0 %v4886_v0 }
 0x64e   :  { %4423 = vmatpush3.bf16.msra.mxu1 %v5265_v42  ;;  %4444 = vmatpush3.bf16.msra.mxu0 %v5317_v24 }
 0x64f   :  { %4448 = vmatprep.subr.bf16.mxu1 %v4886_v0  ;;  %4445 = vmatprep.subr.bf16.mxu0 %v4886_v0 }
 0x651   :  { %3681 = vmatmul.mubr.f32.vlgmr.msra.gmra.mrb[18].mxu1 %v1196_v44  ;;  %v5414_v44 = vpack.c.bf16 %v1508_v43, %v1507_v62  ;;  %v5501_v62 = vld [vmem:[#allocation4 + $0x208] ss:$0 sm:$0xff] }
 0x652   :  { %4447 = vmatpush3.bf16.msra.mxu0 %v5321_v22  ;;  %3750 = vmatprep.mubr.msk.f32.mxu1 %vm4887_vm0, %v4888_v1  ;;  %v156_v43 = vadd.f32 %v5501_v62, %v5131_v9 }
 0x653   :  { %4472 = vmatprep.subr.bf16.mxu0 %v4886_v0  ;;  %4450 = vmatpush3.bf16.msra.mxu1 %v5393_v45 }
 0x654   :  { %4451 = vmatprep.subr.bf16.mxu1 %v4886_v0 }
 0x657   :  { %4453 = vmatpush3.bf16.msra.mxu1 %v5401_v49 }
 0x658   :  { %4454 = vmatprep.subr.bf16.mxu1 %v4886_v0 }
 0x65b   :  { %4456 = vmatpush3.bf16.msra.mxu1 %v5406_v33 }
 0x65c   :  { %4457 = vmatprep.subr.bf16.mxu1 %v4886_v0 }
 0x65f   :  { %4459 = vmatpush3.bf16.msra.mxu1 %v5410_v37 }
 0x660   :  { %4460 = vmatprep.subr.bf16.mxu1 %v4886_v0 }
 0x663   :  { %4462 = vmatpush3.bf16.msra.mxu1 %v5414_v44 }
 0x664   :  { %4463 = vmatprep.subr.bf16.mxu1 %v4886_v0 }
 0x704   :  { %v1295_v54 = vpop.f32.mrb[16].mxu1 }
 0x705   :  { %v3612_v60 = vpop.f32.mrb[17].mxu1 }
 0x706   :  { %v1511_v60 = vld [vmem:[#allocation4 + $0xe8] sm:$0xff] }
 0x708   :  { %v1365_v6 = vpop.f32.mrb[12].mxu0 }
 0x709   :  { %v1366_v63 = vadd.f32 %v1365_v6, %v1295_v54  ;;  %v3647_v3 = vpop.f32.mrb[13].mxu0  ;;  %v5418_v54 = vpack.c.bf16 %v1510_v47, %v1509_v46  ;;  %v1512_v6 = vld [vmem:[#allocation4 + $0xf0] sm:$0xff] }
 0x70b   :  { %v1369_v14 = vadd.f32 %v5141_v17, %v1366_v63  ;;  %4465 = vmatpush3.bf16.msra.mxu1 %v5418_v54  ;;  %v5422_v63 = vpack.c.bf16 %v1512_v6, %v1511_v60 }
 0x70c   :  { %4466 = vmatprep.subr.bf16.mxu1 %v4886_v0 }
 0x70d   :  { %v2763_v5 = vmul.f32 -1.442695, %v1369_v14 }
 0x70f   :  { %4785 = vpow2.f32 %v2763_v5  ;;  %4468 = vmatpush3.bf16.msra.mxu1 %v5422_v63  ;;  %v1513_v5 = vld [vmem:[#allocation4 + $0xf8] sm:$0xff] }
 0x710   :  { %4787 = vtanh.f32 %v1369_v14  ;;  %4469 = vmatprep.subr.bf16.mxu1 %v4886_v0 }
 0x719   :  { %v4786_v29 = vpop.eup %4785 }
 0x71a   :  { %v1373_v18 = vadd.f32 1.0, %v4786_v29  ;;  %v4788_v32 = vpop.eup %4787  ;;  %v1514_v29 = vld [vmem:[#allocation4 + $0x100] sm:$0xff] }
 0x71c   :  { %4789 = vrcp.f32 %v1373_v18 }
 0x724   :  { %v1475_v16 = vpop.f32.mrb[18].mxu1 }
 0x725   :  { %v1479_v34 = vadd.f32 %v1475_v16, %v151_v31  ;;  %v3682_v39 = vpop.f32.mrb[19].mxu1  ;;  %v5428_v31 = vpack.c.bf16 %v1514_v29, %v1513_v5 }
 0x726   :  { %v4790_v51 = vpop.eup %4789 }
 0x727   :  { %v2764_v21 = vmul.f32 -1.442695, %v1479_v34  ;;  %v1377_v38 = vsel %vm184_vm2, %v4790_v51, %v4788_v32  ;;  %4471 = vmatpush3.bf16.msra.mxu1 %v5428_v31 }
 0x728   :  { %1382 = vrot.lane.b32.xlu0 %v1377_v38, %s4891_s12  ;;  %1378 = vrot.lane.b32.xlu1 %v1377_v38, %s4890_s9 }
 0x729   :  { %4791 = vpow2.f32 %v2764_v21  ;;  %4496 = vmatprep.subr.bf16.mxu1 %v4886_v0 }
 0x72a   :  { %4793 = vtanh.f32 %v1479_v34 }
 0x72c   :  { %1380 = vrot.lane.b32.xlu1 %v1377_v38, %s4889_s8 }
 0x733   :  { %v4792_v8 = vpop.eup %4791 }
 0x734   :  { %v1483_v41 = vadd.f32 1.0, %v4792_v8  ;;  %v4794_v3 = vpop.eup %4793 }
 0x736   :  { %4795 = vrcp.f32 %v1483_v41 }
 0x740   :  { %v4796_v14 = vpop.eup %4795 }
 0x741   :  { %v1487_v18 = vsel %vm184_vm2, %v4796_v14, %v4794_v3 }
 0x742   :  { %1492 = vrot.lane.b32.xlu1 %v1487_v18, %s4891_s12  ;;  %1488 = vrot.lane.b32.xlu0 %v1487_v18, %s4890_s9 }
 0x746   :  { %1490 = vrot.lane.b32.xlu0 %v1487_v18, %s4889_s8 }
 0x79a   :  { %v1383_v16 = vpop.permute.xlu0 %1382  ;;  %v1379_v25 = vpop.permute.xlu1 %1378 }
 0x79b   :  { %v1385_v28 = vmul.f32 %v1383_v16, %v1377_v38  ;;  %v1384_v32 = vmul.f32 %v1379_v25, %v5336_v30 }
 0x79d   :  { %v5436_v34 = vadd.f32 %v1385_v28, %v1384_v32 }
 0x79e   :  { %v1381_v51 = vpop.permute.xlu1 %1380 }
 0x79f   :  { %4797 = vtanh.f32 %v5436_v34 }
 0x7a9   :  { %v4798_v39 = vpop.eup %4797 }
 0x7aa   :  { %v5439_v21 = vmul.f32 %v4798_v39, %v1381_v51 }
 0x7ac   :  { %3716 = vmatmul.mubr.f32.vlgmr.msra.gmra.mrb[14].mxu0 %v5439_v21 }
 0x7ad   :  { %4474 = vmatpush3.bf16.msra.mxu0 %v5343_v40  ;;  %3785 = vmatprep.mubr.msk.f32.mxu0 %vm4887_vm0, %v4888_v1 }
 0x7ae   :  { %4475 = vmatprep.subr.bf16.mxu0 %v4886_v0 }
 0x7b1   :  { %4477 = vmatpush3.bf16.msra.mxu0 %v5349_v27 }
 0x7b2   :  { %4478 = vmatprep.subr.bf16.mxu0 %v4886_v0 }
 0x7b4   :  { %v1493_v30 = vpop.permute.xlu1 %1492  ;;  %v1489_v38 = vpop.permute.xlu0 %1488 }
 0x7b5   :  { %v1495_v2 = vmul.f32 %v1493_v30, %v1487_v18  ;;  %v1494_v10 = vmul.f32 %v1489_v38, %v5340_v57  ;;  %4480 = vmatpush3.bf16.msra.mxu0 %v5355_v53 }
 0x7b6   :  { %4481 = vmatprep.subr.bf16.mxu0 %v4886_v0 }
 0x7b7   :  { %v5451_v55 = vadd.f32 %v1495_v2, %v1494_v10 }
 0x7b8   :  { %v1491_v61 = vpop.permute.xlu0 %1490 }
 0x7b9   :  { %4799 = vtanh.f32 %v5451_v55  ;;  %4483 = vmatpush3.bf16.msra.mxu0 %v5246_v20 }
 0x7ba   :  { %4484 = vmatprep.subr.bf16.mxu0 %v4886_v0 }
 0x7bd   :  { %4486 = vmatpush3.bf16.msra.mxu0 %v5253_v7 }
 0x7be   :  { %4487 = vmatprep.subr.bf16.mxu0 %v4886_v0 }
 0x7c1   :  { %4489 = vmatpush3.bf16.msra.mxu0 %v5257_v13 }
 0x7c2   :  { %4490 = vmatprep.subr.bf16.mxu0 %v4886_v0 }
 0x7c3   :  { %v4800_v57 = vpop.eup %4799 }
 0x7c4   :  { %v1498_v35 = vmul.f32 %v4800_v57, %v1491_v61 }
 0x7c5   :  { %4492 = vmatpush3.bf16.msra.mxu0 %v5261_v19 }
 0x7c6   :  { %3751 = vmatmul.mubr.f32.vlgmr.msra.gmra.mrb[20].mxu1 %v1498_v35  ;;  %4493 = vmatprep.subr.bf16.mxu0 %v4886_v0 }
 0x7c7   :  { %4498 = vmatpush3.bf16.msra.mxu1 %v5290_v15  ;;  %3820 = vmatprep.mubr.msk.f32.mxu1 %vm4887_vm0, %v4888_v1 }
 0x7c8   :  { %4499 = vmatprep.subr.bf16.mxu1 %v4886_v0 }
 0x7c9   :  { %4495 = vmatpush3.bf16.msra.mxu0 %v5265_v42 }
 0x7ca   :  { %4520 = vmatprep.subr.bf16.mxu0 %v4886_v0 }
 0x7cb   :  { %4501 = vmatpush3.bf16.msra.mxu1 %v5293_v48 }
 0x7cc   :  { %3786 = vmatmul.mubr.f32.vlgmr.msra.gmra.mrb[16].mxu0 %v1498_v35  ;;  %4502 = vmatprep.subr.bf16.mxu1 %v4886_v0 }
 0x7cd   :  { %4522 = vmatpush3.bf16.msra.mxu0 %v5393_v45  ;;  %3855 = vmatprep.mubr.msk.f32.mxu0 %vm4887_vm0, %v4888_v1 }
 0x7ce   :  { %4523 = vmatprep.subr.bf16.mxu0 %v4886_v0 }
 0x7cf   :  { %4504 = vmatpush3.bf16.msra.mxu1 %v5297_v52 }
 0x7d0   :  { %4505 = vmatprep.subr.bf16.mxu1 %v4886_v0 }
 0x7d1   :  { %4525 = vmatpush3.bf16.msra.mxu0 %v5401_v49 }
 0x7d2   :  { %4526 = vmatprep.subr.bf16.mxu0 %v4886_v0 }
 0x7d3   :  { %4507 = vmatpush3.bf16.msra.mxu1 %v5301_v58 }
 0x7d4   :  { %4508 = vmatprep.subr.bf16.mxu1 %v4886_v0 }
 0x7d5   :  { %4528 = vmatpush3.bf16.msra.mxu0 %v5406_v33 }
 0x7d6   :  { %4529 = vmatprep.subr.bf16.mxu0 %v4886_v0 }
 0x7d7   :  { %4510 = vmatpush3.bf16.msra.mxu1 %v5309_v59 }
 0x7d8   :  { %4511 = vmatprep.subr.bf16.mxu1 %v4886_v0 }
 0x7d9   :  { %4531 = vmatpush3.bf16.msra.mxu0 %v5410_v37 }
 0x7da   :  { %4532 = vmatprep.subr.bf16.mxu0 %v4886_v0 }
 0x7db   :  { %4513 = vmatpush3.bf16.msra.mxu1 %v5313_v4 }
 0x7dc   :  { %4514 = vmatprep.subr.bf16.mxu1 %v4886_v0 }
 0x7dd   :  { %4534 = vmatpush3.bf16.msra.mxu0 %v5414_v44 }
 0x7de   :  { %4535 = vmatprep.subr.bf16.mxu0 %v4886_v0 }
 0x7df   :  { %4516 = vmatpush3.bf16.msra.mxu1 %v5317_v24 }
 0x7e0   :  { %4517 = vmatprep.subr.bf16.mxu1 %v4886_v0 }
 0x7e1   :  { %4537 = vmatpush3.bf16.msra.mxu0 %v5418_v54 }
 0x7e2   :  { %4538 = vmatprep.subr.bf16.mxu0 %v4886_v0 }
 0x7e3   :  { %4519 = vmatpush3.bf16.msra.mxu1 %v5321_v22 }
 0x7e4   :  { %4544 = vmatprep.subr.bf16.mxu1 %v4886_v0 }
 0x7e5   :  { %4540 = vmatpush3.bf16.msra.mxu0 %v5422_v63 }
 0x7e6   :  { %4541 = vmatprep.subr.bf16.mxu0 %v4886_v0 }
 0x7e9   :  { %4543 = vmatpush3.bf16.msra.mxu0 %v5428_v31 }
 0x7ea   :  { %4568 = vmatprep.subr.bf16.mxu0 %v4886_v0 }
 0x87f   :  { %v1597_v20 = vpop.f32.mrb[14].mxu0 }
 0x880   :  { %v3717_v7 = vpop.f32.mrb[15].mxu0 }
 0x899   :  { %v1667_v13 = vpop.f32.mrb[20].mxu1 }
 0x89a   :  { %v1668_v36 = vadd.f32 %v1667_v13, %v1597_v20  ;;  %v3752_v8 = vpop.f32.mrb[21].mxu1 }
 0x89c   :  { %v1671_v41 = vadd.f32 %v5141_v17, %v1668_v36 }
 0x89e   :  { %v2765_v46 = vmul.f32 -1.442695, %v1671_v41 }
 0x89f   :  { %v1777_v47 = vpop.f32.mrb[16].mxu0 }
 0x8a0   :  { %4801 = vpow2.f32 %v2765_v46  ;;  %v1781_v60 = vadd.f32 %v1777_v47, %v156_v43  ;;  %v3787_v6 = vpop.f32.mrb[17].mxu0  ;;  %v2004_v43 = vld [vmem:[#allocation4 + $0x40] sm:$0xff]  ;;  %v2005_v47 = vld [vmem:[#allocation4 + $0x48] sm:$0xff] }
 0x8a1   :  { %v2007_v6 = vld [vmem:[#allocation4 + $0x58] sm:$0xff] }
 0x8a2   :  { %v2766_v3 = vmul.f32 -1.442695, %v1781_v60 }
 0x8a4   :  { %4803 = vpow2.f32 %v2766_v3  ;;  %v2008_v3 = vld [vmem:[#allocation4 + $0x60] sm:$0xff] }
 0x8a5   :  { %4805 = vtanh.f32 %v1671_v41 }
 0x8aa   :  { %v4802_v14 = vpop.eup %4801 }
 0x8ab   :  { %v1675_v5 = vadd.f32 1.0, %v4802_v14 }
 0x8ad   :  { %4807 = vrcp.f32 %v1675_v5 }
 0x8ae   :  { %v4804_v29 = vpop.eup %4803  ;;  %4809 = vtanh.f32 %v1781_v60  ;;  %v2006_v60 = vld [vmem:[#allocation4 + $0x50] sm:$0xff] }
 0x8af   :  { %v1785_v18 = vadd.f32 1.0, %v4804_v29  ;;  %v4806_v17 = vpop.eup %4805  ;;  %v161_v29 = vadd.f32 %v5501_v62, %v5137_v12 }
 0x8b1   :  { %4811 = vrcp.f32 %v1785_v18 }
 0x8b7   :  { %v4808_v16 = vpop.eup %4807 }
 0x8b8   :  { %v1679_v9 = vsel %vm184_vm2, %v4808_v16, %v4806_v17  ;;  %v4810_v25 = vpop.eup %4809 }
 0x8b9   :  { %1684 = vrot.lane.b32.xlu0 %v1679_v9, %s4891_s12  ;;  %1680 = vrot.lane.b32.xlu1 %v1679_v9, %s4890_s9 }
 0x8bb   :  { %v4812_v28 = vpop.eup %4811 }
 0x8bc   :  { %v1789_v32 = vsel %vm184_vm2, %v4812_v28, %v4810_v25 }
 0x8bd   :  { %1794 = vrot.lane.b32.xlu0 %v1789_v32, %s4891_s12  ;;  %1790 = vrot.lane.b32.xlu1 %v1789_v32, %s4890_s9 }
 0x8c1   :  { %1792 = vrot.lane.b32.xlu0 %v1789_v32, %s4889_s8  ;;  %1682 = vrot.lane.b32.xlu1 %v1679_v9, %s4889_s8 }
 0x92b   :  { %v1685_v39 = vpop.permute.xlu0 %1684  ;;  %v1681_v51 = vpop.permute.xlu1 %1680 }
 0x92c   :  { %v1687_v30 = vmul.f32 %v1685_v39, %v1679_v9  ;;  %v1686_v38 = vmul.f32 %v1681_v51, %v5436_v34 }
 0x92e   :  { %v5516_v2 = vadd.f32 %v1687_v30, %v1686_v38 }
 0x92f   :  { %v1795_v10 = vpop.permute.xlu0 %1794  ;;  %v1791_v57 = vpop.permute.xlu1 %1790 }
 0x930   :  { %4813 = vtanh.f32 %v5516_v2  ;;  %v1797_v61 = vmul.f32 %v1795_v10, %v1789_v32  ;;  %v1796_v35 = vmul.f32 %v1791_v57, %v5451_v55  ;;  %v2003_v55 = vld [vmem:[#allocation4 + $0x38] sm:$0xff] }
 0x931   :  { %v5537_v46 = vpack.c.bf16 %v2004_v43, %v2003_v55 }
 0x932   :  { %v5520_v20 = vadd.f32 %v1797_v61, %v1796_v35 }
 0x933   :  { %v1683_v13 = vpop.permute.xlu1 %1682  ;;  %v1793_v8 = vpop.permute.xlu0 %1792 }
 0x934   :  { %4815 = vtanh.f32 %v5520_v20 }
 0x93a   :  { %v4814_v7 = vpop.eup %4813 }
 0x93b   :  { %v5523_v36 = vmul.f32 %v4814_v7, %v1683_v13 }
 0x93d   :  { %3821 = vmatmul.mubr.f32.vlgmr.msra.gmra.mrb[22].mxu1 %v5523_v36 }
 0x93e   :  { %v4816_v34 = vpop.eup %4815  ;;  %4546 = vmatpush3.bf16.msra.mxu1 %v5343_v40  ;;  %3890 = vmatprep.mubr.msk.f32.mxu1 %vm4887_vm0, %v4888_v1 }
 0x93f   :  { %v1800_v41 = vmul.f32 %v4816_v34, %v1793_v8  ;;  %4547 = vmatprep.subr.bf16.mxu1 %v4886_v0 }
 0x941   :  { %3856 = vmatmul.mubr.f32.vlgmr.msra.gmra.mrb[18].mxu0 %v1800_v41 }
 0x942   :  { %4549 = vmatpush3.bf16.msra.mxu1 %v5349_v27  ;;  %4570 = vmatpush3.bf16.msra.mxu0 %v5290_v15  ;;  %v5543_v15 = vpack.c.bf16 %v2006_v60, %v2005_v47  ;;  %v2314_v60 = vld [vmem:[#allocation4 + $0x80] sm:$0xff] }
 0x943   :  { %4550 = vmatprep.subr.bf16.mxu1 %v4886_v0  ;;  %4571 = vmatprep.subr.bf16.mxu0 %v4886_v0 }
 0x944   :  { %3925 = vmatprep.mubr.msk.f32.mxu0 %vm4887_vm0, %v4888_v1 }
 0x946   :  { %4552 = vmatpush3.bf16.msra.mxu1 %v5355_v53  ;;  %4573 = vmatpush3.bf16.msra.mxu0 %v5293_v48  ;;  %v5549_v48 = vpack.c.bf16 %v2008_v3, %v2007_v6 }
 0x947   :  { %4553 = vmatprep.subr.bf16.mxu1 %v4886_v0  ;;  %4574 = vmatprep.subr.bf16.mxu0 %v4886_v0 }
 0x94a   :  { %4555 = vmatpush3.bf16.msra.mxu1 %v5537_v46  ;;  %4576 = vmatpush3.bf16.msra.mxu0 %v5297_v52 }
 0x94b   :  { %4556 = vmatprep.subr.bf16.mxu1 %v4886_v0  ;;  %4577 = vmatprep.subr.bf16.mxu0 %v4886_v0 }
 0x94e   :  { %4558 = vmatpush3.bf16.msra.mxu1 %v5543_v15  ;;  %4579 = vmatpush3.bf16.msra.mxu0 %v5301_v58 }
 0x94f   :  { %4559 = vmatprep.subr.bf16.mxu1 %v4886_v0  ;;  %4580 = vmatprep.subr.bf16.mxu0 %v4886_v0 }
 0x952   :  { %4561 = vmatpush3.bf16.msra.mxu1 %v5549_v48  ;;  %4582 = vmatpush3.bf16.msra.mxu0 %v5309_v59 }
 0x953   :  { %4562 = vmatprep.subr.bf16.mxu1 %v4886_v0  ;;  %4583 = vmatprep.subr.bf16.mxu0 %v4886_v0 }
 0x956   :  { %4564 = vmatpush3.bf16.msra.mxu1 %v5261_v19  ;;  %4585 = vmatpush3.bf16.msra.mxu0 %v5313_v4  ;;  %v5586_v4 = vld [vmem:[#allocation4 + $0x210] ss:$0 sm:$0xff] }
 0x957   :  { %4565 = vmatprep.subr.bf16.mxu1 %v4886_v0  ;;  %4586 = vmatprep.subr.bf16.mxu0 %v4886_v0 }
 0x95a   :  { %4567 = vmatpush3.bf16.msra.mxu1 %v5265_v42  ;;  %4588 = vmatpush3.bf16.msra.mxu0 %v5317_v24 }
 0x95b   :  { %4592 = vmatprep.subr.bf16.mxu1 %v4886_v0  ;;  %4589 = vmatprep.subr.bf16.mxu0 %v4886_v0 }
 0x95d   :  { %3891 = vmatmul.mubr.f32.vlgmr.msra.gmra.mrb[24].mxu1 %v1800_v41 }
 0x95e   :  { %4594 = vmatpush3.bf16.msra.mxu1 %v5393_v45  ;;  %4591 = vmatpush3.bf16.msra.mxu0 %v5321_v22 }
 0x95f   :  { %4595 = vmatprep.subr.bf16.mxu1 %v4886_v0  ;;  %4616 = vmatprep.subr.bf16.mxu0 %v4886_v0 }
 0x960   :  { %3960 = vmatprep.mubr.msk.f32.mxu1 %vm4887_vm0, %v4888_v1 }
 0x962   :  { %4597 = vmatpush3.bf16.msra.mxu1 %v5401_v49 }
 0x963   :  { %4598 = vmatprep.subr.bf16.mxu1 %v4886_v0 }
 0x966   :  { %4600 = vmatpush3.bf16.msra.mxu1 %v5406_v33 }
 0x967   :  { %4601 = vmatprep.subr.bf16.mxu1 %v4886_v0 }
 0x96a   :  { %4603 = vmatpush3.bf16.msra.mxu1 %v5410_v37 }
 0x96b   :  { %4604 = vmatprep.subr.bf16.mxu1 %v4886_v0 }
 0x96e   :  { %4606 = vmatpush3.bf16.msra.mxu1 %v5414_v44 }
 0x96f   :  { %4607 = vmatprep.subr.bf16.mxu1 %v4886_v0 }
 0x972   :  { %4609 = vmatpush3.bf16.msra.mxu1 %v5418_v54 }
 0x973   :  { %4610 = vmatprep.subr.bf16.mxu1 %v4886_v0 }
 0x976   :  { %4612 = vmatpush3.bf16.msra.mxu1 %v5422_v63 }
 0x977   :  { %4613 = vmatprep.subr.bf16.mxu1 %v4886_v0 }
 0x97a   :  { %4615 = vmatpush3.bf16.msra.mxu1 %v5428_v31 }
 0x97b   :  { %4640 = vmatprep.subr.bf16.mxu1 %v4886_v0 }
 0xa10   :  { %v1899_v19 = vpop.f32.mrb[22].mxu1 }
 0xa11   :  { %v3822_v42 = vpop.f32.mrb[23].mxu1 }
 0xa12   :  { %v2428_v42 = vld [vmem:[#allocation4 + $0x140] sm:$0xff] }
 0xa14   :  { %v1969_v52 = vpop.f32.mrb[18].mxu0 }
 0xa15   :  { %v1970_v58 = vadd.f32 %v1969_v52, %v1899_v19  ;;  %v3857_v59 = vpop.f32.mrb[19].mxu0 }
 0xa17   :  { %v1973_v24 = vadd.f32 %v5586_v4, %v1970_v58 }
 0xa19   :  { %v2767_v22 = vmul.f32 -1.442695, %v1973_v24 }
 0xa1b   :  { %4817 = vpow2.f32 %v2767_v22 }
 0xa1c   :  { %4819 = vtanh.f32 %v1973_v24 }
 0xa25   :  { %v4818_v14 = vpop.eup %4817 }
 0xa26   :  { %v1977_v5 = vadd.f32 1.0, %v4818_v14  ;;  %v4820_v17 = vpop.eup %4819 }
 0xa28   :  { %4821 = vrcp.f32 %v1977_v5  ;;  %v166_v5 = vadd.f32 %v5501_v62, %v5135_v11  ;;  %v2432_v11 = vld [vmem:[#allocation4 + $0x160] sm:$0xff] }
 0xa30   :  { %v2079_v18 = vpop.f32.mrb[24].mxu1 }
 0xa31   :  { %v2083_v16 = vadd.f32 %v2079_v18, %v161_v29  ;;  %v3892_v9 = vpop.f32.mrb[25].mxu1 }
 0xa32   :  { %v4822_v25 = vpop.eup %4821 }
 0xa33   :  { %v2768_v28 = vmul.f32 -1.442695, %v2083_v16  ;;  %v1981_v32 = vsel %vm184_vm2, %v4822_v25, %v4820_v17 }
 0xa34   :  { %1986 = vrot.lane.b32.xlu0 %v1981_v32, %s4891_s12  ;;  %1982 = vrot.lane.b32.xlu1 %v1981_v32, %s4890_s9 }
 0xa35   :  { %4823 = vpow2.f32 %v2768_v28  ;;  %v2429_v28 = vld [vmem:[#allocation4 + $0x148] sm:$0xff] }
 0xa36   :  { %4825 = vtanh.f32 %v2083_v16 }
 0xa38   :  { %1984 = vrot.lane.b32.xlu1 %v1981_v32, %s4889_s8 }
 0xa3f   :  { %v4824_v39 = vpop.eup %4823 }
 0xa40   :  { %v2087_v51 = vadd.f32 1.0, %v4824_v39  ;;  %v4826_v12 = vpop.eup %4825 }
 0xa42   :  { %4827 = vrcp.f32 %v2087_v51 }
 0xa4c   :  { %v4828_v30 = vpop.eup %4827 }
 0xa4d   :  { %v2091_v38 = vsel %vm184_vm2, %v4828_v30, %v4826_v12  ;;  %v2431_v30 = vld [vmem:[#allocation4 + $0x158] sm:$0xff] }
 0xa4e   :  { %2096 = vrot.lane.b32.xlu1 %v2091_v38, %s4891_s12  ;;  %2092 = vrot.lane.b32.xlu0 %v2091_v38, %s4890_s9 }
 0xa52   :  { %2094 = vrot.lane.b32.xlu0 %v2091_v38, %s4889_s8 }
 0xaa6   :  { %v1987_v10 = vpop.permute.xlu0 %1986  ;;  %v1983_v57 = vpop.permute.xlu1 %1982 }
 0xaa7   :  { %v1989_v61 = vmul.f32 %v1987_v10, %v1981_v32  ;;  %v1988_v35 = vmul.f32 %v1983_v57, %v5516_v2  ;;  %v2430_v32 = vld [vmem:[#allocation4 + $0x150] sm:$0xff]  ;;  %v2433_v10 = vld [vmem:[#allocation4 + $0x168] sm:$0xff] }
 0xaa8   :  { %v4653_v51 = vpack.c.bf16 %v2430_v32, %v2429_v28  ;;  %v2434_v57 = vld [vmem:[#allocation4 + $0x170] sm:$0xff]  ;;  %v2621_v32 = vld [vmem:[#allocation4 + $0x1f8] sm:$0xff] }
 0xaa9   :  { %v5602_v7 = vadd.f32 %v1989_v61, %v1988_v35  ;;  %v4659_v61 = vpack.c.bf16 %v2434_v57, %v2433_v10 }
 0xaaa   :  { %v1985_v34 = vpop.permute.xlu1 %1984 }
 0xaab   :  { %4829 = vtanh.f32 %v5602_v7 }
 0xab5   :  { %v4830_v13 = vpop.eup %4829 }
 0xab6   :  { %v5605_v8 = vmul.f32 %v4830_v13, %v1985_v34  ;;  %v2435_v13 = vld [vmem:[#allocation4 + $0x178] sm:$0xff]  ;;  %v2436_v34 = vld [vmem:[#allocation4 + $0x180] sm:$0xff] }
 0xab8   :  { %3926 = vmatmul.mubr.f32.vlgmr.msra.gmra.mrb[20].mxu0 %v5605_v8 }
 0xab9   :  { %4618 = vmatpush3.bf16.msra.mxu0 %v5343_v40  ;;  %3995 = vmatprep.mubr.msk.f32.mxu0 %vm4887_vm0, %v4888_v1  ;;  %v2311_v40 = vld [vmem:[#allocation4 + $0x68] sm:$0xff] }
 0xaba   :  { %4619 = vmatprep.subr.bf16.mxu0 %v4886_v0 }
 0xabd   :  { %4621 = vmatpush3.bf16.msra.mxu0 %v5349_v27  ;;  %v2312_v27 = vld [vmem:[#allocation4 + $0x70] sm:$0xff] }
 0xabe   :  { %4622 = vmatprep.subr.bf16.mxu0 %v4886_v0 }
 0xac0   :  { %v2097_v2 = vpop.permute.xlu1 %2096  ;;  %v2093_v41 = vpop.permute.xlu0 %2092 }
 0xac1   :  { %v2099_v55 = vmul.f32 %v2097_v2, %v2091_v38  ;;  %v2098_v43 = vmul.f32 %v2093_v41, %v5520_v20  ;;  %4624 = vmatpush3.bf16.msra.mxu0 %v5355_v53  ;;  %v4635_v20 = vpack.c.bf16 %v2312_v27, %v2311_v40  ;;  %v2313_v53 = vld [vmem:[#allocation4 + $0x78] sm:$0xff]  ;;  %v4656_v38 = vpack.c.bf16 %v2432_v11, %v2431_v30  ;;  %v2608_v40 = vld [vmem:[#allocation4 + $0x190] sm:$0xff] }
 0xac2   :  { %4625 = vmatprep.subr.bf16.mxu0 %v4886_v0  ;;  %v4662_v41 = vpack.c.bf16 %v2436_v34, %v2435_v13 }
 0xac3   :  { %v5617_v47 = vadd.f32 %v2099_v55, %v2098_v43  ;;  %v2607_v43 = vld [vmem:[#allocation4 + $0x188] sm:$0xff] }
 0xac4   :  { %v2095_v3 = vpop.permute.xlu0 %2094 }
 0xac5   :  { %4831 = vtanh.f32 %v5617_v47  ;;  %4627 = vmatpush3.bf16.msra.mxu0 %v5537_v46  ;;  %v4638_v46 = vpack.c.bf16 %v2314_v60, %v2313_v53 }
 0xac6   :  { %4628 = vmatprep.subr.bf16.mxu0 %v4886_v0 }
 0xac9   :  { %4630 = vmatpush3.bf16.msra.mxu0 %v5543_v15 }
 0xaca   :  { %4631 = vmatprep.subr.bf16.mxu0 %v4886_v0 }
 0xacd   :  { %4633 = vmatpush3.bf16.msra.mxu0 %v5549_v48  ;;  %v2426_v48 = vld [vmem:[#allocation4 + $0x130] sm:$0xff] }
 0xace   :  { %4634 = vmatprep.subr.bf16.mxu0 %v4886_v0 }
 0xacf   :  { %v4832_v6 = vpop.eup %4831 }
 0xad0   :  { %v2102_v19 = vmul.f32 %v4832_v6, %v2095_v3 }
 0xad1   :  { %4636 = vmatpush3.bf16.msra.mxu0 %v4635_v20  ;;  %v4688_v20 = vpack.c.bf16 %v2608_v40, %v2607_v43 }
 0xad2   :  { %3961 = vmatmul.mubr.f32.vlgmr.msra.gmra.mrb[26].mxu1 %v2102_v19  ;;  %4637 = vmatprep.subr.bf16.mxu0 %v4886_v0 }
 0xad3   :  { %4030 = vmatprep.mubr.msk.f32.mxu1 %vm4887_vm0, %v4888_v1 }
 0xad5   :  { %4639 = vmatpush3.bf16.msra.mxu0 %v4638_v46 }
 0xad6   :  { %4664 = vmatprep.subr.bf16.mxu0 %v4886_v0 }
 0xad8   :  { %3996 = vmatmul.mubr.f32.vlgmr.msra.gmra.mrb[22].mxu0 %v2102_v19 }
 0xad9   :  { %4666 = vmatpush3.bf16.msra.mxu0 %v5393_v45  ;;  %4065 = vmatprep.mubr.msk.f32.mxu0 %vm4887_vm0, %v4888_v1  ;;  %v2421_v1 = vld [vmem:[#allocation4 + $0x108] sm:$0xff]  ;;  %v2422_v45 = vld [vmem:[#allocation4 + $0x110] sm:$0xff] }
 0xada   :  { %4667 = vmatprep.subr.bf16.mxu0 %v4886_v0 }
 0xadd   :  { %4669 = vmatpush3.bf16.msra.mxu0 %v5401_v49  ;;  %v2423_v49 = vld [vmem:[#allocation4 + $0x118] sm:$0xff] }
 0xade   :  { %4670 = vmatprep.subr.bf16.mxu0 %v4886_v0 }
 0xae1   :  { %4672 = vmatpush3.bf16.msra.mxu0 %v5406_v33  ;;  %v4641_v33 = vpack.c.bf16 %v2422_v45, %v2421_v1 }
 0xae2   :  { %4673 = vmatprep.subr.bf16.mxu0 %v4886_v0 }
 0xae3   :  { %4642 = vmatpush3.bf16.msra.mxu1 %v4641_v33 }
 0xae4   :  { %4643 = vmatprep.subr.bf16.mxu1 %v4886_v0 }
 0xae5   :  { %4675 = vmatpush3.bf16.msra.mxu0 %v5410_v37  ;;  %v2424_v37 = vld [vmem:[#allocation4 + $0x120] sm:$0xff] }
 0xae6   :  { %4676 = vmatprep.subr.bf16.mxu0 %v4886_v0  ;;  %v4644_v15 = vpack.c.bf16 %v2424_v37, %v2423_v49 }
 0xae8   :  { %4645 = vmatpush3.bf16.msra.mxu1 %v4644_v15  ;;  %v2609_v15 = vld [vmem:[#allocation4 + $0x198] sm:$0xff] }
 0xae9   :  { %4678 = vmatpush3.bf16.msra.mxu0 %v5414_v44  ;;  %v2425_v44 = vld [vmem:[#allocation4 + $0x128] sm:$0xff]  ;;  %4646 = vmatprep.subr.bf16.mxu1 %v4886_v0 }
 0xaea   :  { %4679 = vmatprep.subr.bf16.mxu0 %v4886_v0 }
 0xaed   :  { %4681 = vmatpush3.bf16.msra.mxu0 %v5418_v54  ;;  %v4647_v54 = vpack.c.bf16 %v2426_v48, %v2425_v44  ;;  %v2610_v44 = vld [vmem:[#allocation4 + $0x1a0] sm:$0xff] }
 0xaee   :  { %4682 = vmatprep.subr.bf16.mxu0 %v4886_v0 }
 0xaef   :  { %4648 = vmatpush3.bf16.msra.mxu1 %v4647_v54 }
 0xaf0   :  { %4649 = vmatprep.subr.bf16.mxu1 %v4886_v0 }
 0xaf1   :  { %4684 = vmatpush3.bf16.msra.mxu0 %v5422_v63  ;;  %v2427_v63 = vld [vmem:[#allocation4 + $0x138] sm:$0xff] }
 0xaf2   :  { %4685 = vmatprep.subr.bf16.mxu0 %v4886_v0  ;;  %v4650_v52 = vpack.c.bf16 %v2428_v42, %v2427_v63  ;;  %v4692_v42 = vpack.c.bf16 %v2610_v44, %v2609_v15 }
 0xaf4   :  { %4651 = vmatpush3.bf16.msra.mxu1 %v4650_v52  ;;  %v2611_v52 = vld [vmem:[#allocation4 + $0x1a8] sm:$0xff] }
 0xaf5   :  { %4687 = vmatpush3.bf16.msra.mxu0 %v5428_v31  ;;  %4652 = vmatprep.subr.bf16.mxu1 %v4886_v0 }
 0xaf8   :  { %4654 = vmatpush3.bf16.msra.mxu1 %v4653_v51 }
 0xaf9   :  { %4655 = vmatprep.subr.bf16.mxu1 %v4886_v0 }
 0xafc   :  { %4657 = vmatpush3.bf16.msra.mxu1 %v4656_v38 }
 0xafd   :  { %4658 = vmatprep.subr.bf16.mxu1 %v4886_v0 }
 0xb00   :  { %4660 = vmatpush3.bf16.msra.mxu1 %v4659_v61 }
 0xb01   :  { %4661 = vmatprep.subr.bf16.mxu1 %v4886_v0 }
 0xb04   :  { %4663 = vmatpush3.bf16.msra.mxu1 %v4662_v41 }
 0xb05   :  { %4689 = vmatprep.subr.bf16.mxu1 %v4688_v20 }
 0xb8b   :  { %v2201_v31 = vpop.f32.mrb[20].mxu0 }
 0xb8c   :  { %v3927_v58 = vpop.f32.mrb[21].mxu0 }
 0xba5   :  { %v2271_v59 = vpop.f32.mrb[26].mxu1 }
 0xba6   :  { %v2272_v24 = vadd.f32 %v2271_v59, %v2201_v31  ;;  %v3962_v22 = vpop.f32.mrb[27].mxu1  ;;  %v2612_v31 = vld [vmem:[#allocation4 + $0x1b0] sm:$0xff] }
 0xba7   :  { %v2614_v22 = vld [vmem:[#allocation4 + $0x1c0] sm:$0xff] }
 0xba8   :  { %v2275_v14 = vadd.f32 %v5586_v4, %v2272_v24  ;;  %v4696_v24 = vpack.c.bf16 %v2612_v31, %v2611_v52 }
 0xbaa   :  { %v2769_v29 = vmul.f32 -1.442695, %v2275_v14 }
 0xbab   :  { %v2381_v18 = vpop.f32.mrb[22].mxu0 }
 0xbac   :  { %4833 = vpow2.f32 %v2769_v29  ;;  %v2385_v17 = vadd.f32 %v2381_v18, %v166_v5  ;;  %v3997_v16 = vpop.f32.mrb[23].mxu0  ;;  %v2615_v5 = vld [vmem:[#allocation4 + $0x1c8] sm:$0xff]  ;;  %v2616_v29 = vld [vmem:[#allocation4 + $0x1d0] sm:$0xff] }
 0xbad   :  { %v4704_v18 = vpack.c.bf16 %v2616_v29, %v2615_v5  ;;  %v2618_v16 = vld [vmem:[#allocation4 + $0x1e0] sm:$0xff] }
 0xbae   :  { %v2770_v9 = vmul.f32 -1.442695, %v2385_v17 }
 0xbb0   :  { %4835 = vpow2.f32 %v2770_v9 }
 0xbb1   :  { %4837 = vtanh.f32 %v2275_v14 }
 0xbb6   :  { %v4834_v25 = vpop.eup %4833 }
 0xbb7   :  { %v2279_v39 = vadd.f32 1.0, %v4834_v25  ;;  %v2620_v25 = vld [vmem:[#allocation4 + $0x1f0] sm:$0xff] }
 0xbb9   :  { %4839 = vrcp.f32 %v2279_v39  ;;  %v2622_v39 = vld [vmem:[#allocation4 + $0x200] sm:$0xff] }
 0xbba   :  { %v4836_v12 = vpop.eup %4835  ;;  %4841 = vtanh.f32 %v2385_v17  ;;  %v2617_v17 = vld [vmem:[#allocation4 + $0x1d8] sm:$0xff]  ;;  %v4716_v51 = vpack.c.bf16 %v2622_v39, %v2621_v32 }
 0xbbb   :  { %v2389_v62 = vadd.f32 1.0, %v4836_v12  ;;  %v4838_v35 = vpop.eup %4837  ;;  %v4708_v9 = vpack.c.bf16 %v2618_v16, %v2617_v17 }
 0xbbd   :  { %4843 = vrcp.f32 %v2389_v62 }
 0xbc3   :  { %v4840_v2 = vpop.eup %4839 }
 0xbc4   :  { %v2283_v55 = vsel %vm184_vm2, %v4840_v2, %v4838_v35  ;;  %v4842_v27 = vpop.eup %4841 }
 0xbc5   :  { %2288 = vrot.lane.b32.xlu0 %v2283_v55, %s4891_s12  ;;  %2284 = vrot.lane.b32.xlu1 %v2283_v55, %s4890_s9 }
 0xbc7   :  { %v4844_v53 = vpop.eup %4843 }
 0xbc8   :  { %v2393_v0 = vsel %vm184_vm2, %v4844_v53, %v4842_v27 }
 0xbc9   :  { %2398 = vrot.lane.b32.xlu0 %v2393_v0, %s4891_s12  ;;  %2394 = vrot.lane.b32.xlu1 %v2393_v0, %s4890_s9 }
 0xbcd   :  { %2396 = vrot.lane.b32.xlu0 %v2393_v0, %s4889_s8  ;;  %2286 = vrot.lane.b32.xlu1 %v2283_v55, %s4889_s8 }
 0xc37   :  { %v2289_v60 = vpop.permute.xlu0 %2288  ;;  %v2285_v6 = vpop.permute.xlu1 %2284 }
 0xc38   :  { %v2291_v3 = vmul.f32 %v2289_v60, %v2283_v55  ;;  %v2290_v19 = vmul.f32 %v2285_v6, %v5602_v7 }
 0xc3a   :  { %v5668_v46 = vadd.f32 %v2291_v3, %v2290_v19 }
 0xc3b   :  { %v2399_v1 = vpop.permute.xlu0 %2398  ;;  %v2395_v45 = vpop.permute.xlu1 %2394 }
 0xc3c   :  { %4845 = vtanh.f32 %v5668_v46  ;;  %v2401_v49 = vmul.f32 %v2399_v1, %v2393_v0  ;;  %v2400_v33 = vmul.f32 %v2395_v45, %v5617_v47  ;;  %v2613_v47 = vld [vmem:[#allocation4 + $0x1b8] sm:$0xff] }
 0xc3d   :  { %v4700_v14 = vpack.c.bf16 %v2614_v22, %v2613_v47 }
 0xc3e   :  { %v2402_v37 = vadd.f32 %v2401_v49, %v2400_v33 }
 0xc3f   :  { %v2287_v54 = vpop.permute.xlu1 %2286  ;;  %v2397_v58 = vpop.permute.xlu0 %2396 }
 0xc40   :  { %4847 = vtanh.f32 %v2402_v37 }
 0xc46   :  { %v4846_v48 = vpop.eup %4845 }
 0xc47   :  { %v2294_v63 = vmul.f32 %v4846_v48, %v2287_v54 }
 0xc49   :  { %4031 = vmatmul.mubr.f32.vlgmr.msra.gmra.mrb[28].mxu1 %v2294_v63 }
 0xc4a   :  { %v4848_v7 = vpop.eup %4847  ;;  %4691 = vmatpush3.bf16.msra.mxu1 %v4688_v20  ;;  %4100 = vmatprep.mubr.f32.mxu1 %v5161_v26  ;;  %v2619_v26 = vld [vmem:[#allocation4 + $0x1e8] sm:$0xff] }
 0xc4b   :  { %v2404_v59 = vmul.f32 %v4848_v7, %v2397_v58  ;;  %4693 = vmatprep.subr.bf16.mxu1 %v4692_v42  ;;  %v4712_v28 = vpack.c.bf16 %v2620_v25, %v2619_v26 }
 0xc4d   :  { %4066 = vmatmul.mubr.f32.vlgmr.msra.gmra.mrb[24].mxu0 %v2404_v59 }
 0xc4e   :  { %4695 = vmatpush3.bf16.msra.mxu1 %v4692_v42 }
 0xc4f   :  { %4697 = vmatprep.subr.bf16.mxu1 %v4696_v24 }
 0xc52   :  { %4699 = vmatpush3.bf16.msra.mxu1 %v4696_v24 }
 0xc53   :  { %4701 = vmatprep.subr.bf16.mxu1 %v4700_v14 }
 0xc56   :  { %4703 = vmatpush3.bf16.msra.mxu1 %v4700_v14 }
 0xc57   :  { %4705 = vmatprep.subr.bf16.mxu1 %v4704_v18 }
 0xc5a   :  { %4707 = vmatpush3.bf16.msra.mxu1 %v4704_v18 }
 0xc5b   :  { %4709 = vmatprep.subr.bf16.mxu1 %v4708_v9 }
 0xc5e   :  { %4711 = vmatpush3.bf16.msra.mxu1 %v4708_v9 }
 0xc5f   :  { %4713 = vmatprep.subr.bf16.mxu1 %v4712_v28 }
 0xc62   :  { %4715 = vmatpush3.bf16.msra.mxu1 %v4712_v28 }
 0xc63   :  { %4717 = vmatprep.subr.bf16.mxu1 %v4716_v51 }
 0xc66   :  { %4719 = vmatpush3.bf16.msra.mxu1 %v4716_v51 }
 0xc69   :  { %4101 = vmatmul.mubr.f32.vlgmr.msra.gmra.mrb[30].mxu1 %v5235_v56 }
 0xc6a   :  { %4103 = vmatprep.mubr.f32.mxu1 %v5345_v50  ;;  %v2772_v50 = vld [vmem:[#allocation4 + $0x218] ss:$0 sm:$0xff] }
 0xc6d   :  { %4104 = vmatmul.mubr.f32.gmra.mrb[32].mxu1 %v5439_v21 }
 0xc6e   :  { %4106 = vmatprep.mubr.f32.mxu1 %v5523_v36 }
 0xc71   :  { %4107 = vmatmul.mubr.f32.gmra.mrb[34].mxu1 %v5605_v8 }
 0xc72   :  { %4109 = vmatprep.mubr.f32.mxu1 %v2294_v63 }
 0xd1c   :  { %v2503_v12 = vpop.f32.mrb[28].mxu1 }
 0xd1d   :  { %v4032_v30 = vpop.f32.mrb[29].mxu1 }
 0xd20   :  { %v2573_v11 = vpop.f32.mrb[24].mxu0 }
 0xd21   :  { %v2574_v62 = vadd.f32 %v2573_v11, %v2503_v12  ;;  %v4067_v38 = vpop.f32.mrb[25].mxu0 }
 0xd23   :  { %v2577_v10 = vadd.f32 %v5586_v4, %v2574_v62 }
 0xd25   :  { %v2771_v57 = vmul.f32 -1.442695, %v2577_v10 }
 0xd27   :  { %4849 = vpow2.f32 %v2771_v57 }
 0xd28   :  { %4851 = vtanh.f32 %v2577_v10 }
 0xd31   :  { %v4850_v61 = vpop.eup %4849 }
 0xd32   :  { %v2581_v56 = vadd.f32 1.0, %v4850_v61  ;;  %v4852_v35 = vpop.eup %4851 }
 0xd34   :  { %4853 = vrcp.f32 %v2581_v56 }
 0xd3c   :  { %v4102_v21 = vpop.f32.mrb[30].mxu1 }
 0xd3d   :  { %v2700_v36 = vadd.f32 %v4102_v21, %v2772_v50  ;;  %v2694_v13 = vpop.f32.mrb[31].mxu1 }
 0xd3e   :  { %v4854_v8 = vpop.eup %4853  ;;  %v2695_v34 = vadd.f32 %v2772_v50, %v2694_v13 }
 0xd3f   :  { %2734 = vst [vmem:[%s5711_s2 + $0x8] sm:$0xff] %v2700_v36  ;;  %v2585_v4 = vsel %vm184_vm2, %v4854_v8, %v4852_v35 }
 0xd40   :  { %2733 = vst [vmem:[%s5711_s2] sm:$0xff] %v2695_v34  ;;  %v4105_v2 = vpop.f32.mrb[32].mxu1  ;;  %2590 = vrot.lane.b32.xlu0 %v2585_v4, %s4891_s12  ;;  %2586 = vrot.lane.b32.xlu1 %v2585_v4, %s4890_s9 }
 0xd41   :  { %v2710_v41 = vadd.f32 %v4105_v2, %v2772_v50  ;;  %v2704_v55 = vpop.f32.mrb[33].mxu1 }
 0xd42   :  { %v2705_v43 = vadd.f32 %v2772_v50, %v2704_v55 }
 0xd43   :  { %2736 = vst [vmem:[%s5711_s2 + $0x18] sm:$0xff] %v2710_v41 }
 0xd44   :  { %2735 = vst [vmem:[%s5711_s2 + $0x10] sm:$0xff] %v2705_v43  ;;  %v4108_v23 = vpop.f32.mrb[34].mxu1  ;;  %2588 = vrot.lane.b32.xlu1 %v2585_v4, %s4889_s8 }
 0xd45   :  { %v2720_v40 = vadd.f32 %v4108_v23, %v2772_v50  ;;  %v2714_v27 = vpop.f32.mrb[35].mxu1 }
 0xd46   :  { %v2715_v20 = vadd.f32 %v2772_v50, %v2714_v27 }
 0xd47   :  { %2738 = vst [vmem:[%s5711_s2 + $0x28] sm:$0xff] %v2720_v40 }
 0xd48   :  { %2737 = vst [vmem:[%s5711_s2 + $0x20] sm:$0xff] %v2715_v20 }
 0xdb2   :  { %v2591_v53 = vpop.permute.xlu0 %2590  ;;  %v2587_v0 = vpop.permute.xlu1 %2586 }
 0xdb3   :  { %v2593_v60 = vmul.f32 %v2591_v53, %v2585_v4  ;;  %v2592_v6 = vmul.f32 %v2587_v0, %v5668_v46 }
 0xdb5   :  { %v2594_v3 = vadd.f32 %v2593_v60, %v2592_v6 }
 0xdb6   :  { %v2589_v1 = vpop.permute.xlu1 %2588 }
 0xdb7   :  { %4855 = vtanh.f32 %v2594_v3 }
 0xdc1   :  { %v4856_v19 = vpop.eup %4855 }
 0xdc2   :  { %v2596_v45 = vmul.f32 %v4856_v19, %v2589_v1 }
 0xdc4   :  { %4110 = vmatmul.mubr.f32.gmra.mrb[36].mxu1 %v2596_v45 }
 0xe97   :  { %v4111_v49 = vpop.f32.mrb[36].mxu1 }
 0xe98   :  { %v2730_v33 = vadd.f32 %v4111_v49, %v2772_v50  ;;  %v2724_v37 = vpop.f32.mrb[37].mxu1 }
 0xe99   :  { %v2725_v15 = vadd.f32 %v2772_v50, %v2724_v37 }
 0xe9a   :  { %2740 = vst [vmem:[%s5711_s2 + $0x38] sm:$0xff] %v2730_v33 }
 0xe9b   :  { %2739 = vst [vmem:[%s5711_s2 + $0x30] sm:$0xff] %v2725_v15 }
 0xe9c   :  { %2745 = vsyncpa [#allocation5], 1 }

</bundles_post_ra>
